<compile_context>
chip_gen: v6e
topology: v6e:2x2x1
jax: 0.10.0
libtpu: 0.0.40
codegen_flags: <defaults>
</compile_context>

<pallas_src>
import jax
import jax.numpy as jnp
from jax.experimental import pallas as pl
from jax.experimental.pallas import tpu as pltpu

B = 2       # structures per batch (fused into one kernel call)
N = 8       # residues per structure
BN = B * N  # fused node count
F = 16      # input residue features
H = 32      # hidden width
R = 16      # radial basis functions
L = 2       # message-passing layers
PAD = 128   # lane-dense padding of the 3-vector axis (toy size; see TODO above)


def score_kernel(posp_ref, x_ref,                       # (BN,PAD), (BN,F)
                 centers_ref, nonself_ref,              # (1,BN*R), (BN,BN*R)
                 e_ref, et_ref,                         # (BN,BN*R), (BN*R,BN)
                 w_emb_ref, b_emb_ref,                  # (F,H), (1,H)
                 w_rbf_t_ref, w_msg_ref, w_upd_ref,     # (L,BN*R,H), (L,H,H), (L,H,H)
                 w_out_bd_ref, w_pair_ref,              # (BN*R,BN) [1/sigma folded], (H,H)
                 out_ref):                              # (BN,PAD)
    posp = posp_ref[...]                                # [BN, PAD] (cols 3.. are zero)
    x = x_ref[...]                                      # [BN, F]

    # --- node embedding (MXU + relu), batch-fused ---
    h = jnp.maximum(
        jnp.dot(x, w_emb_ref[...], preferred_element_type=jnp.float32)
        + b_emb_ref[...], 0.0)                                          # [BN, H]

    # --- pairwise distances via Gram matrix on the MXU (lane-dense pos) ---
    gram = jax.lax.dot_general(posp, posp, (((1,), (1,)), ((), ())),
                               preferred_element_type=jnp.float32)      # [BN, BN]
    r2 = jnp.sum(posp * posp, axis=-1, keepdims=True)                   # [BN, 1]
    d2 = jnp.maximum(r2 + r2.T - 2.0 * gram, 0.0)
    d = jnp.sqrt(d2 + 1e-8)                                             # [BN, BN]

    # --- radial basis, lane-dense via MXU expansion (no 3D broadcast/reshape) ---
    # d_rep[i, j*R + r] = d[i, j]
    d_rep = jnp.dot(d, e_ref[...], preferred_element_type=jnp.float32)  # [BN, BN*R]
    # mask (self + cross-structure edges) applied ONCE here
    rbf_jr = (jnp.exp(-2.0 * jnp.square(d_rep - centers_ref[...]))
              * nonself_ref[...])                                       # [BN, BN*R]

    # --- distance-gated message passing; all replications/contractions on MXU ---
    for l in range(L):                                                  # static unroll
        msg = jnp.dot(h, w_msg_ref[l], preferred_element_type=jnp.float32)       # [BN, H]
        # msg_rep[j*R+r, h] = msg[j, h]   (MXU, no sublane-merge reshape)
        msg_rep = jnp.dot(et_ref[...], msg, preferred_element_type=jnp.float32)  # [BN*R, H]
        u = msg_rep * w_rbf_t_ref[l]                                              # [BN*R, H]
        # m[i,h] = sum_{j,r} rbf[i,j,r] * w_rbf[l][r,h] * msg[j,h]  (K = BN*R = 256)
        m = jnp.dot(rbf_jr, u, preferred_element_type=jnp.float32)                # [BN, H]
        h = jnp.maximum(
            h + jnp.dot(m, w_upd_ref[l], preferred_element_type=jnp.float32), 0.0)

    # --- equivariant score head: scalar edge coeff (l=0) x relative position (l=1) ---
    # a[i,j] = (1/sigma_i) * sum_r rbf[i,j,r] * w_out_rbf[r]  (block-diag W, scale folded)
    a = jnp.dot(rbf_jr, w_out_bd_ref[...], preferred_element_type=jnp.float32)    # [BN, BN]
    p = jnp.dot(h, w_pair_ref[...], preferred_element_type=jnp.float32)           # [BN, H]
    g = jax.lax.dot_general(h, p, (((1,), (1,)), ((), ())),
                            preferred_element_type=jnp.float32)                   # [BN, BN]
    coeff = a * g                    # self/cross edges already zeroed via rbf mask
    # sum_j coeff_ij * (pos_j - pos_i); padded lanes stay zero -> unmasked lane-dense store
    score = (jnp.dot(coeff, posp, preferred_element_type=jnp.float32)
             - jnp.sum(coeff, axis=1, keepdims=True) * posp)                      # [BN, PAD]

    out_ref[...] = score.astype(out_ref.dtype)


def make_params(key):
    keys = jax.random.split(key, 6)

    def init(k, shape, fan_in):
        return jax.random.normal(k, shape, jnp.float32) / jnp.sqrt(float(fan_in))

    return dict(
        centers=jnp.linspace(0.0, 8.0, R, dtype=jnp.float32).reshape(1, R),
        w_emb=init(keys[0], (F, H), F),
        b_emb=jnp.zeros((1, H), jnp.float32),
        w_rbf=init(keys[1], (L, R, H), R),
        w_msg=init(keys[2], (L, H, H), H),
        w_upd=init(keys[3], (L, H, H), H),
        w_out_rbf=init(keys[4], (1, R), R),
        w_pair=init(keys[5], (H, H), H),
    )


@jax.jit
def score_model(pos, x, sigma, params):
    # --- fuse batch: stack nodes, lane-dense coordinates ---
    posp = jnp.pad(pos.reshape(BN, 3).astype(jnp.float32),
                   ((0, 0), (0, PAD - 3)))                              # (BN, PAD)
    xf = x.reshape(BN, F).astype(jnp.float32)

    # --- constants precomputed in the wrapper (all tiny, built once under jit) ---
    eye_bn = jnp.eye(BN, dtype=jnp.float32)
    E = jnp.repeat(eye_bn, R, axis=1)                                   # (BN, BN*R)
    E_T = E.T                                                           # (BN*R, BN)
    centers_tiled = jnp.tile(params["centers"], (1, BN))                # (1, BN*R)

    struct_id = jnp.repeat(jnp.arange(B), N)                            # (BN,)
    same = (struct_id[:, None] == struct_id[None, :]).astype(jnp.float32)
    mask = same * (1.0 - eye_bn)                                        # non-self, same structure
    nonself_rep = jnp.repeat(mask, R, axis=1)                           # (BN, BN*R)

    w_rbf_tiled = jnp.tile(params["w_rbf"], (1, BN, 1))                 # (L, BN*R, H)

    # block-diagonal output-RBF weight with 1/sigma folded into the columns:
    # w_out_bd[j*R + r, j'] = (j == j') * w_out_rbf[r] / sigma[struct(j')]
    inv_sigma_node = jnp.repeat(1.0 / jnp.asarray(sigma, jnp.float32), N)   # (BN,)
    w_out_bd = jnp.kron(eye_bn, params["w_out_rbf"].reshape(R, 1))      # (BN*R, BN)
    w_out_bd = w_out_bd * inv_sigma_node[None, :]

    def full_spec(shape):
        return pl.BlockSpec(shape, lambda i: (0,) * len(shape))

    out_flat = pl.pallas_call(
        score_kernel,
        out_shape=jax.ShapeDtypeStruct((BN, PAD), jnp.float32),
        grid=(1,),                                                      # single fused step
        in_specs=[
            full_spec((BN, PAD)),          # posp
            full_spec((BN, F)),            # x
            full_spec((1, BN * R)),        # centers_tiled
            full_spec((BN, BN * R)),       # nonself_rep
            full_spec((BN, BN * R)),       # E
            full_spec((BN * R, BN)),       # E_T
            full_spec((F, H)),             # w_emb
            full_spec((1, H)),             # b_emb
            full_spec((L, BN * R, H)),     # w_rbf_tiled
            full_spec((L, H, H)),          # w_msg
            full_spec((L, H, H)),          # w_upd
            full_spec((BN * R, BN)),       # w_out_bd (1/sigma folded)
            full_spec((H, H)),             # w_pair
        ],
        out_specs=full_spec((BN, PAD)),
        compiler_params=pltpu.CompilerParams(
            dimension_semantics=("arbitrary",)),
    )(posp, xf, centers_tiled, nonself_rep, E, E_T,
      params["w_emb"], params["b_emb"], w_rbf_tiled,
      params["w_msg"], params["w_upd"], w_out_bd, params["w_pair"])

    return out_flat.reshape(B, N, PAD)[:, :, :3]


def score_model_ref(pos, x, sigma, params):
    """Pure-JAX reference with the original (unoptimized) formulation."""
    def single(pos1, x1, sigma1):
        h = jnp.maximum(x1 @ params["w_emb"] + params["b_emb"], 0.0)
        diff = pos1[:, None, :] - pos1[None, :, :]
        d = jnp.sqrt(jnp.sum(diff * diff, axis=-1) + 1e-8)
        rbf = jnp.exp(-2.0 * jnp.square(d[:, :, None] - params["centers"][None, :, :]))
        nonself = 1.0 - jnp.eye(N, dtype=jnp.float32)
        for l in range(L):
            e = (rbf.reshape(N * N, R) @ params["w_rbf"][l]).reshape(N, N, H)
            e = e * nonself[:, :, None]
            msg = h @ params["w_msg"][l]
            m = jnp.sum(e * msg[None, :, :], axis=1)
            h = jnp.maximum(h + m @ params["w_upd"][l], 0.0)
        a = jnp.sum(rbf * params["w_out_rbf"][None, :, :], axis=-1)
        p = h @ params["w_pair"]
        g = h @ p.T
        coeff = a * g * nonself
        score = coeff @ pos1 - jnp.sum(coeff, axis=1, keepdims=True) * pos1
        return score / sigma1
    return jax.vmap(single)(pos, x, sigma)


if __name__ == "__main__":
    key = jax.random.PRNGKey(0)
    kp, kx, kw = jax.random.split(key, 3)
    pos = jax.random.normal(kp, (B, N, 3), jnp.float32) * 3.0   # residue coordinates
    x = jax.random.normal(kx, (B, N, F), jnp.float32)           # residue features
    sigma = jnp.array([1.5, 0.7], jnp.float32)                  # per-structure noise
    params = make_params(kw)

    out = score_model(pos, x, sigma, params)
    jax.block_until_ready(out)
    assert out.shape == (B, N, 3) and out.dtype == jnp.float32
    assert bool(jnp.all(jnp.isfinite(out)))

    ref = score_model_ref(pos, x, sigma, params)
    rel_err = float(jnp.max(jnp.abs(out - ref)) / (jnp.max(jnp.abs(ref)) + 1e-6))
    assert rel_err < 5e-3, f"kernel/reference mismatch, rel_err={rel_err}"
    print("KERNEL_OK")
</pallas_src>

<mosaic_0001>
module attributes {stable_mosaic.version = 11 : i64} {
  func.func @score_kernel(%arg0: i32, %arg1: memref<16x128xf32, #tpu.memory_space<vmem>>, %arg2: memref<16x16xf32, #tpu.memory_space<vmem>>, %arg3: memref<1x256xf32, #tpu.memory_space<vmem>>, %arg4: memref<16x256xf32, #tpu.memory_space<vmem>>, %arg5: memref<16x256xf32, #tpu.memory_space<vmem>>, %arg6: memref<256x16xf32, #tpu.memory_space<vmem>>, %arg7: memref<16x32xf32, #tpu.memory_space<vmem>>, %arg8: memref<1x32xf32, #tpu.memory_space<vmem>>, %arg9: memref<2x256x32xf32, #tpu.memory_space<vmem>>, %arg10: memref<2x32x32xf32, #tpu.memory_space<vmem>>, %arg11: memref<2x32x32xf32, #tpu.memory_space<vmem>>, %arg12: memref<256x16xf32, #tpu.memory_space<vmem>>, %arg13: memref<32x32xf32, #tpu.memory_space<vmem>>, %arg14: memref<16x128xf32, #tpu.memory_space<vmem>>) attributes {dimension_semantics = [#tpu.dimension_semantics<arbitrary>], iteration_bounds = array<i64: 1>, scalar_prefetch = 0 : i64, scratch_operands = 0 : i64, tpu.core_type = #tpu.core_type<tc>, window_params = [{pipeline_mode = #tpu.pipeline_mode<synchronous>, transform_indices = @transform_0, window_bounds = array<i64: 16, 128>}, {pipeline_mode = #tpu.pipeline_mode<synchronous>, transform_indices = @transform_1, window_bounds = array<i64: 16, 16>}, {pipeline_mode = #tpu.pipeline_mode<synchronous>, transform_indices = @transform_2, window_bounds = array<i64: 1, 256>}, {pipeline_mode = #tpu.pipeline_mode<synchronous>, transform_indices = @transform_3, window_bounds = array<i64: 16, 256>}, {pipeline_mode = #tpu.pipeline_mode<synchronous>, transform_indices = @transform_4, window_bounds = array<i64: 16, 256>}, {pipeline_mode = #tpu.pipeline_mode<synchronous>, transform_indices = @transform_5, window_bounds = array<i64: 256, 16>}, {pipeline_mode = #tpu.pipeline_mode<synchronous>, transform_indices = @transform_6, window_bounds = array<i64: 16, 32>}, {pipeline_mode = #tpu.pipeline_mode<synchronous>, transform_indices = @transform_7, window_bounds = array<i64: 1, 32>}, {pipeline_mode = #tpu.pipeline_mode<synchronous>, transform_indices = @transform_8, window_bounds = array<i64: 2, 256, 32>}, {pipeline_mode = #tpu.pipeline_mode<synchronous>, transform_indices = @transform_9, window_bounds = array<i64: 2, 32, 32>}, {pipeline_mode = #tpu.pipeline_mode<synchronous>, transform_indices = @transform_10, window_bounds = array<i64: 2, 32, 32>}, {pipeline_mode = #tpu.pipeline_mode<synchronous>, transform_indices = @transform_11, window_bounds = array<i64: 256, 16>}, {pipeline_mode = #tpu.pipeline_mode<synchronous>, transform_indices = @transform_12, window_bounds = array<i64: 32, 32>}, {pipeline_mode = #tpu.pipeline_mode<synchronous>, transform_indices = @transform_13, window_bounds = array<i64: 16, 128>}]} {
    %c0 = arith.constant 0 : index
    %c0_0 = arith.constant 0 : index
    %0 = vector.load %arg1[%c0, %c0_0] : memref<16x128xf32, #tpu.memory_space<vmem>>, vector<16x128xf32>
    %c0_1 = arith.constant 0 : index
    %c0_2 = arith.constant 0 : index
    %1 = vector.load %arg2[%c0_1, %c0_2] : memref<16x16xf32, #tpu.memory_space<vmem>>, vector<16x16xf32>
    %c0_3 = arith.constant 0 : index
    %c0_4 = arith.constant 0 : index
    %2 = vector.load %arg7[%c0_3, %c0_4] : memref<16x32xf32, #tpu.memory_space<vmem>>, vector<16x32xf32>
    %cst = arith.constant dense<0.000000e+00> : vector<16x32xf32>
    %3 = tpu.matmul %1, %2, %cst {dimension_numbers = #tpu.dot_dimension_numbers<[1], [0], [0], [1], [0, 0, 1, 1], [], []>} : vector<16x16xf32>, vector<16x32xf32>, vector<16x32xf32> -> vector<16x32xf32>
    %c0_5 = arith.constant 0 : index
    %c0_6 = arith.constant 0 : index
    %4 = vector.load %arg8[%c0_5, %c0_6] : memref<1x32xf32, #tpu.memory_space<vmem>>, vector<1x32xf32>
    %5 = vector.broadcast %4 : vector<1x32xf32> to vector<16x32xf32>
    %6 = arith.addf %3, %5 : vector<16x32xf32>
    %cst_7 = arith.constant 0.000000e+00 : f32
    %7 = vector.broadcast %cst_7 : f32 to vector<16x32xf32>
    %8 = arith.maximumf %6, %7 : vector<16x32xf32>
    %cst_8 = arith.constant dense<0.000000e+00> : vector<16x16xf32>
    %9 = tpu.matmul %0, %0, %cst_8 {dimension_numbers = #tpu.dot_dimension_numbers<[1], [1], [0], [0], [0, 0, 1, 0], [], []>} : vector<16x128xf32>, vector<16x128xf32>, vector<16x16xf32> -> vector<16x16xf32>
    %10 = arith.mulf %0, %0 : vector<16x128xf32>
    %cst_9 = arith.constant dense<0.000000e+00> : vector<16xf32>
    %11 = vector.multi_reduction <add>, %10, %cst_9 [1] : vector<16x128xf32> to vector<16xf32>
    %12 = vector.shape_cast %11 : vector<16xf32> to vector<16x1xf32>
    %13 = tpu.transpose %12, [1, 0] : vector<16x1xf32> -> vector<1x16xf32>
    %14 = vector.broadcast %12 : vector<16x1xf32> to vector<16x16xf32>
    %15 = vector.broadcast %13 : vector<1x16xf32> to vector<16x16xf32>
    %16 = arith.addf %14, %15 : vector<16x16xf32>
    %cst_10 = arith.constant 2.000000e+00 : f32
    %17 = vector.broadcast %cst_10 : f32 to vector<16x16xf32>
    %18 = arith.mulf %17, %9 : vector<16x16xf32>
    %19 = arith.subf %16, %18 : vector<16x16xf32>
    %cst_11 = arith.constant 0.000000e+00 : f32
    %20 = vector.broadcast %cst_11 : f32 to vector<16x16xf32>
    %21 = arith.maximumf %19, %20 : vector<16x16xf32>
    %cst_12 = arith.constant 9.99999993E-9 : f32
    %22 = vector.broadcast %cst_12 : f32 to vector<16x16xf32>
    %23 = arith.addf %21, %22 : vector<16x16xf32>
    %24 = math.sqrt %23 : vector<16x16xf32>
    %c0_13 = arith.constant 0 : index
    %c0_14 = arith.constant 0 : index
    %25 = vector.load %arg5[%c0_13, %c0_14] : memref<16x256xf32, #tpu.memory_space<vmem>>, vector<16x256xf32>
    %cst_15 = arith.constant dense<0.000000e+00> : vector<16x256xf32>
    %26 = tpu.matmul %24, %25, %cst_15 {dimension_numbers = #tpu.dot_dimension_numbers<[1], [0], [0], [1], [0, 0, 1, 1], [], []>} : vector<16x16xf32>, vector<16x256xf32>, vector<16x256xf32> -> vector<16x256xf32>
    %c0_16 = arith.constant 0 : index
    %c0_17 = arith.constant 0 : index
    %27 = vector.load %arg3[%c0_16, %c0_17] : memref<1x256xf32, #tpu.memory_space<vmem>>, vector<1x256xf32>
    %28 = vector.broadcast %27 : vector<1x256xf32> to vector<16x256xf32>
    %29 = arith.subf %26, %28 : vector<16x256xf32>
    %30 = arith.mulf %29, %29 : vector<16x256xf32>
    %cst_18 = arith.constant -2.000000e+00 : f32
    %31 = vector.broadcast %cst_18 : f32 to vector<16x256xf32>
    %32 = arith.mulf %31, %30 : vector<16x256xf32>
    %33 = math.exp %32 : vector<16x256xf32>
    %c0_19 = arith.constant 0 : index
    %c0_20 = arith.constant 0 : index
    %34 = vector.load %arg4[%c0_19, %c0_20] : memref<16x256xf32, #tpu.memory_space<vmem>>, vector<16x256xf32>
    %35 = arith.mulf %33, %34 : vector<16x256xf32>
    %c0_21 = arith.constant 0 : index
    %c0_22 = arith.constant 0 : index
    %c0_23 = arith.constant 0 : index
    %36 = vector.load %arg10[%c0_21, %c0_22, %c0_23] : memref<2x32x32xf32, #tpu.memory_space<vmem>>, vector<1x32x32xf32>
    %37 = vector.shape_cast %36 : vector<1x32x32xf32> to vector<32x32xf32>
    %cst_24 = arith.constant dense<0.000000e+00> : vector<16x32xf32>
    %38 = tpu.matmul %8, %37, %cst_24 {dimension_numbers = #tpu.dot_dimension_numbers<[1], [0], [0], [1], [0, 0, 1, 1], [], []>} : vector<16x32xf32>, vector<32x32xf32>, vector<16x32xf32> -> vector<16x32xf32>
    %c0_25 = arith.constant 0 : index
    %c0_26 = arith.constant 0 : index
    %39 = vector.load %arg6[%c0_25, %c0_26] : memref<256x16xf32, #tpu.memory_space<vmem>>, vector<256x16xf32>
    %cst_27 = arith.constant dense<0.000000e+00> : vector<256x32xf32>
    %40 = tpu.matmul %39, %38, %cst_27 {dimension_numbers = #tpu.dot_dimension_numbers<[1], [0], [0], [1], [0, 0, 1, 1], [], []>} : vector<256x16xf32>, vector<16x32xf32>, vector<256x32xf32> -> vector<256x32xf32>
    %c0_28 = arith.constant 0 : index
    %c0_29 = arith.constant 0 : index
    %c0_30 = arith.constant 0 : index
    %41 = vector.load %arg9[%c0_28, %c0_29, %c0_30] : memref<2x256x32xf32, #tpu.memory_space<vmem>>, vector<1x256x32xf32>
    %42 = vector.shape_cast %41 : vector<1x256x32xf32> to vector<256x32xf32>
    %43 = arith.mulf %40, %42 : vector<256x32xf32>
    %cst_31 = arith.constant dense<0.000000e+00> : vector<16x32xf32>
    %44 = tpu.matmul %35, %43, %cst_31 {dimension_numbers = #tpu.dot_dimension_numbers<[1], [0], [0], [1], [0, 0, 1, 1], [], []>} : vector<16x256xf32>, vector<256x32xf32>, vector<16x32xf32> -> vector<16x32xf32>
    %c0_32 = arith.constant 0 : index
    %c0_33 = arith.constant 0 : index
    %c0_34 = arith.constant 0 : index
    %45 = vector.load %arg11[%c0_32, %c0_33, %c0_34] : memref<2x32x32xf32, #tpu.memory_space<vmem>>, vector<1x32x32xf32>
    %46 = vector.shape_cast %45 : vector<1x32x32xf32> to vector<32x32xf32>
    %cst_35 = arith.constant dense<0.000000e+00> : vector<16x32xf32>
    %47 = tpu.matmul %44, %46, %cst_35 {dimension_numbers = #tpu.dot_dimension_numbers<[1], [0], [0], [1], [0, 0, 1, 1], [], []>} : vector<16x32xf32>, vector<32x32xf32>, vector<16x32xf32> -> vector<16x32xf32>
    %48 = arith.addf %8, %47 : vector<16x32xf32>
    %cst_36 = arith.constant 0.000000e+00 : f32
    %49 = vector.broadcast %cst_36 : f32 to vector<16x32xf32>
    %50 = arith.maximumf %48, %49 : vector<16x32xf32>
    %c1 = arith.constant 1 : index
    %c0_37 = arith.constant 0 : index
    %c0_38 = arith.constant 0 : index
    %51 = vector.load %arg10[%c1, %c0_37, %c0_38] : memref<2x32x32xf32, #tpu.memory_space<vmem>>, vector<1x32x32xf32>
    %52 = vector.shape_cast %51 : vector<1x32x32xf32> to vector<32x32xf32>
    %cst_39 = arith.constant dense<0.000000e+00> : vector<16x32xf32>
    %53 = tpu.matmul %50, %52, %cst_39 {dimension_numbers = #tpu.dot_dimension_numbers<[1], [0], [0], [1], [0, 0, 1, 1], [], []>} : vector<16x32xf32>, vector<32x32xf32>, vector<16x32xf32> -> vector<16x32xf32>
    %c0_40 = arith.constant 0 : index
    %c0_41 = arith.constant 0 : index
    %54 = vector.load %arg6[%c0_40, %c0_41] : memref<256x16xf32, #tpu.memory_space<vmem>>, vector<256x16xf32>
    %cst_42 = arith.constant dense<0.000000e+00> : vector<256x32xf32>
    %55 = tpu.matmul %54, %53, %cst_42 {dimension_numbers = #tpu.dot_dimension_numbers<[1], [0], [0], [1], [0, 0, 1, 1], [], []>} : vector<256x16xf32>, vector<16x32xf32>, vector<256x32xf32> -> vector<256x32xf32>
    %c1_43 = arith.constant 1 : index
    %c0_44 = arith.constant 0 : index
    %c0_45 = arith.constant 0 : index
    %56 = vector.load %arg9[%c1_43, %c0_44, %c0_45] : memref<2x256x32xf32, #tpu.memory_space<vmem>>, vector<1x256x32xf32>
    %57 = vector.shape_cast %56 : vector<1x256x32xf32> to vector<256x32xf32>
    %58 = arith.mulf %55, %57 : vector<256x32xf32>
    %cst_46 = arith.constant dense<0.000000e+00> : vector<16x32xf32>
    %59 = tpu.matmul %35, %58, %cst_46 {dimension_numbers = #tpu.dot_dimension_numbers<[1], [0], [0], [1], [0, 0, 1, 1], [], []>} : vector<16x256xf32>, vector<256x32xf32>, vector<16x32xf32> -> vector<16x32xf32>
    %c1_47 = arith.constant 1 : index
    %c0_48 = arith.constant 0 : index
    %c0_49 = arith.constant 0 : index
    %60 = vector.load %arg11[%c1_47, %c0_48, %c0_49] : memref<2x32x32xf32, #tpu.memory_space<vmem>>, vector<1x32x32xf32>
    %61 = vector.shape_cast %60 : vector<1x32x32xf32> to vector<32x32xf32>
    %cst_50 = arith.constant dense<0.000000e+00> : vector<16x32xf32>
    %62 = tpu.matmul %59, %61, %cst_50 {dimension_numbers = #tpu.dot_dimension_numbers<[1], [0], [0], [1], [0, 0, 1, 1], [], []>} : vector<16x32xf32>, vector<32x32xf32>, vector<16x32xf32> -> vector<16x32xf32>
    %63 = arith.addf %50, %62 : vector<16x32xf32>
    %cst_51 = arith.constant 0.000000e+00 : f32
    %64 = vector.broadcast %cst_51 : f32 to vector<16x32xf32>
    %65 = arith.maximumf %63, %64 : vector<16x32xf32>
    %c0_52 = arith.constant 0 : index
    %c0_53 = arith.constant 0 : index
    %66 = vector.load %arg12[%c0_52, %c0_53] : memref<256x16xf32, #tpu.memory_space<vmem>>, vector<256x16xf32>
    %cst_54 = arith.constant dense<0.000000e+00> : vector<16x16xf32>
    %67 = tpu.matmul %35, %66, %cst_54 {dimension_numbers = #tpu.dot_dimension_numbers<[1], [0], [0], [1], [0, 0, 1, 1], [], []>} : vector<16x256xf32>, vector<256x16xf32>, vector<16x16xf32> -> vector<16x16xf32>
    %c0_55 = arith.constant 0 : index
    %c0_56 = arith.constant 0 : index
    %68 = vector.load %arg13[%c0_55, %c0_56] : memref<32x32xf32, #tpu.memory_space<vmem>>, vector<32x32xf32>
    %cst_57 = arith.constant dense<0.000000e+00> : vector<16x32xf32>
    %69 = tpu.matmul %65, %68, %cst_57 {dimension_numbers = #tpu.dot_dimension_numbers<[1], [0], [0], [1], [0, 0, 1, 1], [], []>} : vector<16x32xf32>, vector<32x32xf32>, vector<16x32xf32> -> vector<16x32xf32>
    %cst_58 = arith.constant dense<0.000000e+00> : vector<16x16xf32>
    %70 = tpu.matmul %65, %69, %cst_58 {dimension_numbers = #tpu.dot_dimension_numbers<[1], [1], [0], [0], [0, 0, 1, 0], [], []>} : vector<16x32xf32>, vector<16x32xf32>, vector<16x16xf32> -> vector<16x16xf32>
    %71 = arith.mulf %67, %70 : vector<16x16xf32>
    %cst_59 = arith.constant dense<0.000000e+00> : vector<16x128xf32>
    %72 = tpu.matmul %71, %0, %cst_59 {dimension_numbers = #tpu.dot_dimension_numbers<[1], [0], [0], [1], [0, 0, 1, 1], [], []>} : vector<16x16xf32>, vector<16x128xf32>, vector<16x128xf32> -> vector<16x128xf32>
    %cst_60 = arith.constant dense<0.000000e+00> : vector<16xf32>
    %73 = vector.multi_reduction <add>, %71, %cst_60 [1] : vector<16x16xf32> to vector<16xf32>
    %74 = vector.shape_cast %73 : vector<16xf32> to vector<16x1xf32>
    %75 = vector.broadcast %74 : vector<16x1xf32> to vector<16x128xf32>
    %76 = arith.mulf %75, %0 : vector<16x128xf32>
    %77 = arith.subf %72, %76 : vector<16x128xf32>
    %c0_61 = arith.constant 0 : index
    %c0_62 = arith.constant 0 : index
    %78 = vector.load %arg14[%c0_61, %c0_62] : memref<16x128xf32, #tpu.memory_space<vmem>>, vector<16x128xf32>
    tpu.vector_store %arg14[%c0_61, %c0_62], %77 {strides = array<i32>} : memref<16x128xf32, #tpu.memory_space<vmem>>, vector<16x128xf32>,
    return
  }
  func.func @transform_0(%arg0: i32) -> (i32, i32) {
    %c0_i32 = arith.constant 0 : i32
    %c0_i32_0 = arith.constant 0 : i32
    %c0_i32_1 = arith.constant 0 : i32
    return %c0_i32, %c0_i32_0 : i32, i32
  }
  func.func @transform_1(%arg0: i32) -> (i32, i32) {
    %c0_i32 = arith.constant 0 : i32
    %c0_i32_0 = arith.constant 0 : i32
    %c0_i32_1 = arith.constant 0 : i32
    return %c0_i32, %c0_i32_0 : i32, i32
  }
  func.func @transform_2(%arg0: i32) -> (i32, i32) {
    %c0_i32 = arith.constant 0 : i32
    %c0_i32_0 = arith.constant 0 : i32
    %c0_i32_1 = arith.constant 0 : i32
    return %c0_i32, %c0_i32_0 : i32, i32
  }
  func.func @transform_3(%arg0: i32) -> (i32, i32) {
    %c0_i32 = arith.constant 0 : i32
    %c0_i32_0 = arith.constant 0 : i32
    %c0_i32_1 = arith.constant 0 : i32
    return %c0_i32, %c0_i32_0 : i32, i32
  }
  func.func @transform_4(%arg0: i32) -> (i32, i32) {
    %c0_i32 = arith.constant 0 : i32
    %c0_i32_0 = arith.constant 0 : i32
    %c0_i32_1 = arith.constant 0 : i32
    return %c0_i32, %c0_i32_0 : i32, i32
  }
  func.func @transform_5(%arg0: i32) -> (i32, i32) {
    %c0_i32 = arith.constant 0 : i32
    %c0_i32_0 = arith.constant 0 : i32
    %c0_i32_1 = arith.constant 0 : i32
    return %c0_i32, %c0_i32_0 : i32, i32
  }
  func.func @transform_6(%arg0: i32) -> (i32, i32) {
    %c0_i32 = arith.constant 0 : i32
    %c0_i32_0 = arith.constant 0 : i32
    %c0_i32_1 = arith.constant 0 : i32
    return %c0_i32, %c0_i32_0 : i32, i32
  }
  func.func @transform_7(%arg0: i32) -> (i32, i32) {
    %c0_i32 = arith.constant 0 : i32
    %c0_i32_0 = arith.constant 0 : i32
    %c0_i32_1 = arith.constant 0 : i32
    return %c0_i32, %c0_i32_0 : i32, i32
  }
  func.func @transform_8(%arg0: i32) -> (i32, i32, i32) {
    %c0_i32 = arith.constant 0 : i32
    %c0_i32_0 = arith.constant 0 : i32
    %c0_i32_1 = arith.constant 0 : i32
    %c0_i32_2 = arith.constant 0 : i32
    return %c0_i32, %c0_i32_0, %c0_i32_1 : i32, i32, i32
  }
  func.func @transform_9(%arg0: i32) -> (i32, i32, i32) {
    %c0_i32 = arith.constant 0 : i32
    %c0_i32_0 = arith.constant 0 : i32
    %c0_i32_1 = arith.constant 0 : i32
    %c0_i32_2 = arith.constant 0 : i32
    return %c0_i32, %c0_i32_0, %c0_i32_1 : i32, i32, i32
  }
  func.func @transform_10(%arg0: i32) -> (i32, i32, i32) {
    %c0_i32 = arith.constant 0 : i32
    %c0_i32_0 = arith.constant 0 : i32
    %c0_i32_1 = arith.constant 0 : i32
    %c0_i32_2 = arith.constant 0 : i32
    return %c0_i32, %c0_i32_0, %c0_i32_1 : i32, i32, i32
  }
  func.func @transform_11(%arg0: i32) -> (i32, i32) {
    %c0_i32 = arith.constant 0 : i32
    %c0_i32_0 = arith.constant 0 : i32
    %c0_i32_1 = arith.constant 0 : i32
    return %c0_i32, %c0_i32_0 : i32, i32
  }
  func.func @transform_12(%arg0: i32) -> (i32, i32) {
    %c0_i32 = arith.constant 0 : i32
    %c0_i32_0 = arith.constant 0 : i32
    %c0_i32_1 = arith.constant 0 : i32
    return %c0_i32, %c0_i32_0 : i32, i32
  }
  func.func @transform_13(%arg0: i32) -> (i32, i32) {
    %c0_i32 = arith.constant 0 : i32
    %c0_i32_0 = arith.constant 0 : i32
    %c0_i32_1 = arith.constant 0 : i32
    return %c0_i32, %c0_i32_0 : i32, i32
  }
}

</mosaic_0001>

<bundles_post_ra>
// kernel: mul.21
= control target key start
LH: loop header
LB: loop body
LE: loop exit
PB: predicated region body
PF: predicated region fallthrough
CT: control target
= control target key end

     0   :  { %vm8_vm0 = vcmask 64512   ;;  %vm14_vm1 = vcmask 130112   ;;  %s42_s0 = inlined_call_operand.vmem [shape: f32[2,8], index: 0, kind: input, shape index: {}]   ;;  %s43_s1 = inlined_call_operand.vmem [shape: f32[16], index: 1, kind: output, shape index: {}]  }
   0x1   :  { %v5_v0 = vld [vmem:[%s42_s0] sm:$0x3]  ;;  %s25_s0 = smov 8  }
   0x2   :  { %6 = vst [vmem:[#allocation1] sm:$0x3] %v5_v0 }
   0x9   :  { %v11_v1 = vld [vmem:[#allocation1 + $0x1] sm:$0x1]   ;;  %v7_v2 = vld [vmem:[#allocation1] sm:$0x1]  }
   0xa   :  { %12 = vrot.lane.b32.xlu0 %v11_v1, %s25_s0  ;;  %9 = vst.msk [vmem:[#allocation0] sm:$0x1] %vm8_vm0, %v7_v2  }
  0x7c   :  { %v13_v3 = vpop.permute.xlu0 %12  }
  0x7d   :  { %15 = vst.msk [vmem:[#allocation0] sm:$0x1] %vm14_vm1, %v13_v3  }
  0x84   :  { %v20_v4 = vld [vmem:[#allocation0] sm:$0x1] }
  0x85   :  { %23 = vst [vmem:[%s43_s1] sm:$0x1] %v20_v4 }

// kernel: eq.10
= control target key start
LH: loop header
LB: loop body
LE: loop exit
PB: predicated region body
PF: predicated region fallthrough
CT: control target
= control target key end

     0   :  { %vm8_vm0 = vcmask 64512   ;;  %vm14_vm1 = vcmask 130112   ;;  %s42_s0 = inlined_call_operand.vmem [shape: s32[2,8], index: 0, kind: input, shape index: {}]   ;;  %s43_s1 = inlined_call_operand.vmem [shape: s32[16], index: 1, kind: output, shape index: {}]  }
   0x1   :  { %v5_v0 = vld [vmem:[%s42_s0] sm:$0x3]  ;;  %s25_s0 = smov 8  }
   0x2   :  { %6 = vst [vmem:[#allocation1] sm:$0x3] %v5_v0 }
   0x9   :  { %v11_v1 = vld [vmem:[#allocation1 + $0x1] sm:$0x1]   ;;  %v7_v2 = vld [vmem:[#allocation1] sm:$0x1]  }
   0xa   :  { %12 = vrot.lane.b32.xlu0 %v11_v1, %s25_s0  ;;  %9 = vst.msk [vmem:[#allocation0] sm:$0x1] %vm8_vm0, %v7_v2  }
  0x7c   :  { %v13_v3 = vpop.permute.xlu0 %12  }
  0x7d   :  { %15 = vst.msk [vmem:[#allocation0] sm:$0x1] %vm14_vm1, %v13_v3  }
  0x84   :  { %v20_v4 = vld [vmem:[#allocation0] sm:$0x1] }
  0x85   :  { %23 = vst [vmem:[%s43_s1] sm:$0x1] %v20_v4 }

// kernel: score_model.1
= control target key start
LH: loop header
LB: loop body
LE: loop exit
PB: predicated region body
PF: predicated region fallthrough
CT: control target
= control target key end

     0   :  { %vm57_vm0 = vcmask 130048   ;;  %v2544_v12 = vmov 0.0   ;;  %v254_v16 = vlaneseq  ;;  %vm413_vm5 = vcmask 261120   ;;  %s3489_s0 = inlined_call_operand.vmem [shape: f32[16,128], index: 0, kind: input, shape index: {}]   ;;  %s3490_s6 = inlined_call_operand.vmem [shape: f32[16,32], index: 6, kind: input, shape index: {}]   ;;  %s3491_s1 = inlined_call_operand.vmem [shape: f32[16,16], index: 1, kind: input, shape index: {}]   ;;  %s3492_s4 = inlined_call_operand.vmem [shape: f32[16,256], index: 4, kind: input, shape index: {}]   ;;  %s3493_s9 = inlined_call_operand.vmem [shape: f32[2,32,32], index: 9, kind: input, shape index: {}]   ;;  %s3494_s7 = inlined_call_operand.vmem [shape: f32[1,32], index: 7, kind: input, shape index: {}]   ;;  %s3495_s5 = inlined_call_operand.vmem [shape: f32[256,16], index: 5, kind: input, shape index: {}]   ;;  %s3496_s2 = inlined_call_operand.vmem [shape: f32[1,256], index: 2, kind: input, shape index: {}]   ;;  %s3497_s3 = inlined_call_operand.vmem [shape: f32[16,256], index: 3, kind: input, shape index: {}]   ;;  %s3498_s8 = inlined_call_operand.vmem [shape: f32[2,256,32], index: 8, kind: input, shape index: {}]   ;;  %s3499_s10 = inlined_call_operand.vmem [shape: f32[2,32,32], index: 10, kind: input, shape index: {}]   ;;  %s3500_s11 = inlined_call_operand.vmem [shape: f32[256,16], index: 11, kind: input, shape index: {}]   ;;  %s3501_s12 = inlined_call_operand.vmem [shape: f32[32,32], index: 12, kind: input, shape index: {}]   ;;  %s3502_s13 = inlined_call_operand.vmem [shape: f32[16,128], index: 13, kind: output, shape index: {}]  }
   0x1   :  { %v44_v0 = vld [vmem:[%s3489_s0] sm:$0xff]  ;;  %v45_v1 = vld [vmem:[%s3489_s0 + $0x8] sm:$0xff]  ;;  %v285_v10 = vld [vmem:[%s3492_s4 + $0x18] sm:$0xff] }
   0x2   :  { %v49_v2 = vld [vmem:[%s3490_s6 + $0x8] sm:$0xff]  ;;  %v216_v3 = vmul.f32 %v44_v0, %v44_v0  ;;  %2349 = vmatprep.subr.mxu1 %v45_v1  ;;  %2353 = vmatprep.mubr.f32.mxu1 %v44_v0  ;;  %v46_v4 = vld [vmem:[%s3491_s1] sm:$0xff]  ;;  %v217_v6 = vmul.f32 %v45_v1, %v45_v1  ;;  %v284_v11 = vld [vmem:[%s3492_s4 + $0x10] sm:$0xff]  ;;  %v2650_v17 = vshrl.u32 %v254_v16, 7 }
   0x3   :  { %2350 = vmatpush3.xpose.msra.mxu1 %v45_v1  ;;  %2342 = vmatprep.subr.mxu0 %v49_v2  ;;  %v48_v5 = vld [vmem:[%s3490_s6] sm:$0xff]  ;;  %v47_v7 = vld [vmem:[%s3491_s1 + $0x8] sm:$0xff]  ;;  %v412_v15 = vld [vmem:[%s3493_s9 + $0x18] sm:$0xff] }
   0x4   :  { %218 = vadd.xlane.f32.xlu0 %v216_v3  ;;  %2351 = vmatprep.subr.mxu1 %v44_v0  ;;  %v283_v13 = vld [vmem:[%s3492_s4 + $0x8] sm:$0xff]  ;;  %v282_v14 = vld [vmem:[%s3492_s4] sm:$0xff]  ;;  %v256_v19 = vsub.s32 0, %v2650_v17  ;;  %v411_v44 = vld [vmem:[%s3493_s9 + $0x10] sm:$0xff]  ;;  %v377_v55 = vsub.s32 1, %v2650_v17 }
   0x5   :  { %2343 = vmatpush3.msra.mxu0 %v49_v2  ;;  %2346 = vmatprep.mubr.msk.f32.mxu0 %vm57_vm0, %v46_v4  ;;  %v1989_v35 = vld [vmem:[%s3494_s7] ss:$0 sm:$0xff]  ;;  %v410_v48 = vld [vmem:[%s3493_s9 + $0x8] sm:$0xff]  ;;  %v2698_v16 = vld [vmem:[%s3495_s5 + $0x10] sm:$0xff] }
   0x6   :  { %2344 = vmatprep.subr.mxu0 %v48_v5  ;;  %v409_v51 = vld [vmem:[%s3493_s9] sm:$0xff] }
   0x7   :  { %2352 = vmatpush3.xpose.msra.mxu1 %v44_v0  ;;  %2345 = vmatpush3.msra.mxu0 %v48_v5  ;;  %v2682_v53 = vld [vmem:[%s3495_s5] sm:$0xff] }
   0x8   :  { %220 = vadd.xlane.f32.xlu0 %v217_v6  ;;  %2347 = vmatmul.mubr.msk.f32.vlgmr.msra.gmra.mxu0 %vm57_vm0, %v47_v7  ;;  %v369_v54 = vld [vmem:[%s3496_s2] sm:$0x3] }
   0x9   :  { %356 = vmatprep.mubr.f32.mxu0 %v2544_v12  ;;  %320 = vmatprep.subr.mxu0 %v285_v10  ;;  %v374_v56 = vrot.slane %v369_v54, %v256_v19  ;;  %v378_v57 = vrot.slane %v369_v54, %v377_v55  ;;  %v2859_v54 = vld [vmem:[%s3495_s5 + $0xb0] sm:$0xff]  ;;  %v2868_v55 = vld [vmem:[%s3495_s5 + $0xb8] sm:$0xff] }
   0xa   :  { %2354 = vmatmul.mubr.f32.vlgmr.msra.gmra.mxu1 %v45_v1  ;;  %321 = vmatpush1.msra.mxu0 %v284_v11  ;;  %3529 = vst [vmem:[#allocation9_spill] sm:$0xff] %v2859_v54  ;;  %3530 = vst [vmem:[#allocation10_spill] sm:$0xff] %v2868_v55 }
   0xb   :  { %322 = vmatprep.subr.mxu0 %v283_v13  ;;  %2371 = vmatprep.mubr.msk.f32.mxu1 %vm57_vm0, %v2682_v53  ;;  %v2693_v13 = vld [vmem:[%s3495_s5 + $0x8] sm:$0xff] }
   0xc   :  { %323 = vmatpush1.msra.mxu0 %v282_v14 }
   0xd   :  { %2356 = vmatprep.subr.mxu0 %v412_v15 }
  0x8d   :  { %v219_v8 = vpop.xlane.xlu0 %218 }
  0x8e   :  { %222 = vxpose.xlu1.b32.start [1/2] (short) (narrow) %v219_v8, 8 }
  0x91   :  { %v221_v9 = vpop.xlane.xlu0 %220 }
  0x92   :  { %223 = vxpose.xlu1.b32.end [2/2] (short) (narrow) %v221_v9, 8 }
  0xc8   :  { %v2348_v33 = vpop.f32.mrf.mxu0 }
  0xc9   :  { %v2666_v49 = vadd.f32 %v2348_v33, %v1989_v35  ;;  %v404_v33 = vld [vmem:[%s3497_s3 + $0x18] sm:$0xff] }
  0xca   :  { %v2355_v18 = vpop.f32.mrf.mxu1  ;;  %v130_v36 = vpop.f32.mrf.mxu0 }
  0xcb   :  { %v261_v23 = vmul.f32 2.0, %v2355_v18  ;;  %v2656_v40 = vadd.f32 %v1989_v35, %v130_v36  ;;  %v3504_v52 = vmax.f32 %v2666_v49, 0.0  ;;  %v2707_v18 = vld [vmem:[%s3495_s5 + $0x18] sm:$0xff] }
  0xcc   :  { %v207_v21 = vpop.f32.mrf.mxu1 }
  0xcd   :  { %v260_v26 = vmul.f32 2.0, %v207_v21  ;;  %v3503_v46 = vmax.f32 %v2656_v40, 0.0  ;;  %v2726_v21 = vld [vmem:[%s3495_s5 + $0x30] sm:$0xff] }
 0x10a   :  { %v238_v20 = vpop.trf.xlu1 }
 0x10b   :  { %v257_v22 = vrot.slane %v238_v20, %v256_v19  ;;  %v2712_v19 = vld [vmem:[%s3495_s5 + $0x20] sm:$0xff]  ;;  %v2721_v20 = vld [vmem:[%s3495_s5 + $0x28] sm:$0xff] }
 0x10d   :  { %v258_v24 = vadd.f32 %v257_v22, %v219_v8  ;;  %v259_v25 = vadd.f32 %v257_v22, %v221_v9  ;;  %v401_v22 = vld [vmem:[%s3497_s3] sm:$0xff] }
 0x10f   :  { %v263_v27 = vsub.f32 %v259_v25, %v261_v23  ;;  %v262_v28 = vsub.f32 %v258_v24, %v260_v26  ;;  %v2738_v24 = vld [vmem:[%s3495_s5 + $0x38] sm:$0xff]  ;;  %v402_v25 = vld [vmem:[%s3497_s3 + $0x8] sm:$0xff]  ;;  %v2746_v26 = vld [vmem:[%s3495_s5 + $0x40] sm:$0xff] }
 0x111   :  { %v265_v29 = vmax.f32 %v263_v27, 0.0  ;;  %v264_v30 = vmax.f32 %v262_v28, 0.0 }
 0x113   :  { %v267_v31 = vadd.f32 1e-08, %v265_v29  ;;  %v266_v32 = vadd.f32 1e-08, %v264_v30  ;;  %v403_v29 = vld [vmem:[%s3497_s3 + $0x10] sm:$0xff] }
 0x115   :  { %2530 = vrsqrt.f32 %v267_v31  ;;  %vm270_vm1 = vcmp.eq.f32.partialorder %v266_v32, inf  ;;  %v273_v41 = vand.u32 2147483648, %v266_v32  ;;  %vm272_vm2 = vcmp.eq.f32.partialorder %v266_v32, 0.0 }
 0x116   :  { %2532 = vrsqrt.f32 %v266_v32  ;;  %vm277_vm3 = vcmp.eq.f32.partialorder %v267_v31, inf  ;;  %v280_v47 = vand.u32 2147483648, %v267_v31  ;;  %vm279_vm4 = vcmp.eq.f32.partialorder %v267_v31, 0.0 }
 0x122   :  { %v2531_v34 = vpop.eup %2530 }
 0x123   :  { %v2533_v37 = vpop.eup %2532  ;;  %v276_v39 = vmul.f32 %v2531_v34, %v267_v31  ;;  %v2771_v34 = vld [vmem:[%s3495_s5 + $0x50] sm:$0xff] }
 0x124   :  { %v269_v38 = vmul.f32 %v2533_v37, %v266_v32 }
 0x125   :  { %v278_v45 = vsel %vm277_vm3, %v267_v31, %v276_v39  ;;  %v2789_v39 = vld [vmem:[%s3495_s5 + $0x60] sm:$0xff] }
 0x126   :  { %v271_v42 = vsel %vm270_vm1, %v266_v32, %v269_v38  ;;  %v281_v50 = vsel %vm279_vm4, %v280_v47, %v278_v45  ;;  %v2762_v32 = vld [vmem:[%s3495_s5 + $0x48] sm:$0xff]  ;;  %v2784_v38 = vld [vmem:[%s3495_s5 + $0x58] sm:$0xff]  ;;  %v2831_v47 = vld [vmem:[%s3495_s5 + $0x90] sm:$0xff] }
 0x127   :  { %v274_v43 = vsel %vm272_vm2, %v273_v41, %v271_v42  ;;  %v2798_v41 = vld [vmem:[%s3495_s5 + $0x68] sm:$0xff]  ;;  %v2803_v42 = vld [vmem:[%s3495_s5 + $0x70] sm:$0xff]  ;;  %3525 = vst [vmem:[#allocation5_spill] sm:$0xff] %v2831_v47 }
 0x128   :  { %1992 = vmatmul.mubr.msk.f32.vlgmr.msra.gmra.mxu0 %vm57_vm0, %v274_v43  ;;  %v2812_v43 = vld [vmem:[%s3495_s5 + $0x78] sm:$0xff]  ;;  %v2826_v45 = vld [vmem:[%s3495_s5 + $0x88] sm:$0xff] }
 0x129   :  { %2357 = vmatpush3.msra.mxu0 %v412_v15  ;;  %362 = vmatprep.mubr.f32.mxu0 %v2544_v12  ;;  %3524 = vst [vmem:[#allocation4_spill] sm:$0xff] %v2826_v45 }
 0x12a   :  { %2358 = vmatprep.subr.mxu0 %v411_v44 }
 0x12b   :  { %2359 = vmatpush3.msra.mxu0 %v411_v44  ;;  %v2817_v44 = vld [vmem:[%s3495_s5 + $0x80] sm:$0xff] }
 0x12c   :  { %1993 = vmatmul.mubr.msk.f32.gmra.mxu0 %vm57_vm0, %v281_v50  ;;  %2360 = vmatprep.subr.mxu0 %v410_v48  ;;  %3523 = vst [vmem:[#allocation3_spill] sm:$0xff] %v2817_v44  ;;  %v2845_v50 = vld [vmem:[%s3495_s5 + $0xa0] sm:$0xff] }
 0x12d   :  { %2361 = vmatpush3.msra.mxu0 %v410_v48  ;;  %2364 = vmatprep.mubr.msk.f32.mxu0 %vm413_vm5, %v3503_v46  ;;  %v2840_v48 = vld [vmem:[%s3495_s5 + $0x98] sm:$0xff]  ;;  %3527 = vst [vmem:[#allocation7_spill] sm:$0xff] %v2845_v50 }
 0x12e   :  { %2362 = vmatprep.subr.mxu0 %v409_v51  ;;  %3526 = vst [vmem:[#allocation6_spill] sm:$0xff] %v2840_v48 }
 0x12f   :  { %2363 = vmatpush3.msra.mxu0 %v409_v51  ;;  %v2854_v51 = vld [vmem:[%s3495_s5 + $0xa8] sm:$0xff] }
 0x130   :  { %2365 = vmatmul.mubr.msk.f32.vlgmr.msra.gmra.mxu0 %vm413_vm5, %v3504_v52  ;;  %3528 = vst [vmem:[#allocation8_spill] sm:$0xff] %v2854_v51 }
 0x1e8   :  { %v358_v58 = vpop.f32.mrf.mxu0 }
 0x1e9   :  { %v381_v59 = vsub.f32 %v358_v58, %v374_v56  ;;  %v2887_v58 = vld [vmem:[%s3495_s5 + $0xd0] sm:$0xff] }
 0x1ea   :  { %v360_v60 = vpop.f32.mrf.mxu0  ;;  %3533 = vst [vmem:[#allocation13_spill] sm:$0xff] %v2887_v58 }
 0x1eb   :  { %v385_v61 = vmul.f32 %v381_v59, %v381_v59  ;;  %v382_v62 = vsub.f32 %v360_v60, %v378_v57  ;;  %v2896_v59 = vld [vmem:[%s3495_s5 + $0xd8] sm:$0xff]  ;;  %v2901_v60 = vld [vmem:[%s3495_s5 + $0xe0] sm:$0xff] }
 0x1ec   :  { %v364_v63 = vpop.f32.mrf.mxu0  ;;  %3534 = vst [vmem:[#allocation14_spill] sm:$0xff] %v2896_v59  ;;  %3535 = vst [vmem:[#allocation15_spill] sm:$0xff] %v2901_v60 }
 0x1ed   :  { %v389_v0 = vmul.f32 -2.0, %v385_v61  ;;  %v386_v1 = vmul.f32 %v382_v62, %v382_v62  ;;  %v383_v2 = vsub.f32 %v364_v63, %v374_v56  ;;  %v2873_v56 = vld [vmem:[%s3495_s5 + $0xc0] sm:$0xff]  ;;  %v2910_v61 = vld [vmem:[%s3495_s5 + $0xe8] sm:$0xff]  ;;  %v2915_v62 = vld [vmem:[%s3495_s5 + $0xf0] sm:$0xff] }
 0x1ee   :  { %v366_v3 = vpop.f32.mrf.mxu0  ;;  %3531 = vst [vmem:[#allocation11_spill] sm:$0xff] %v2873_v56  ;;  %3536 = vst [vmem:[#allocation16_spill] sm:$0xff] %v2910_v61  ;;  %v2924_v63 = vld [vmem:[%s3495_s5 + $0xf8] sm:$0xff] }
 0x1ef   :  { %v393_v4 = vmul.f32 1.442695, %v389_v0  ;;  %v390_v5 = vmul.f32 -2.0, %v386_v1  ;;  %v387_v6 = vmul.f32 %v383_v2, %v383_v2  ;;  %v384_v7 = vsub.f32 %v366_v3, %v378_v57  ;;  %v2882_v57 = vld [vmem:[%s3495_s5 + $0xc8] sm:$0xff]  ;;  %3537 = vst [vmem:[#allocation17_spill] sm:$0xff] %v2915_v62  ;;  %3538 = vst [vmem:[#allocation18_spill] sm:$0xff] %v2924_v63 }
 0x1f0   :  { %v2366_v8 = vpop.f32.mrf.mxu0  ;;  %3532 = vst [vmem:[#allocation12_spill] sm:$0xff] %v2882_v57 }
 0x1f1   :  { %2534 = vpow2.f32 %v393_v4  ;;  %v395_v9 = vmul.f32 1.442695, %v390_v5  ;;  %v391_v10 = vmul.f32 -2.0, %v387_v6  ;;  %v388_v11 = vmul.f32 %v384_v7, %v384_v7  ;;  %2367 = vmatprep.subr.mxu1 %v2366_v8 }
 0x1f2   :  { %v486_v12 = vpop.f32.mrf.mxu0  ;;  %2368 = vmatpush3.msra.mxu1 %v2366_v8 }
 0x1f3   :  { %2536 = vpow2.f32 %v395_v9  ;;  %v397_v14 = vmul.f32 1.442695, %v391_v10  ;;  %v392_v15 = vmul.f32 -2.0, %v388_v11  ;;  %2369 = vmatprep.subr.mxu1 %v486_v12 }
 0x1f4   :  { %2370 = vmatpush3.msra.mxu1 %v486_v12 }
 0x1f5   :  { %2538 = vpow2.f32 %v397_v14  ;;  %v399_v17 = vmul.f32 1.442695, %v392_v15  ;;  %2372 = vmatmul.mubr.msk.f32.vlgmr.msra.gmra.mxu1 %vm57_vm0, %v2693_v13 }
 0x1f6   :  { %2374 = vmatprep.mubr.msk.f32.mxu1 %vm57_vm0, %v2698_v16 }
 0x1f7   :  { %2540 = vpow2.f32 %v399_v17 }
 0x1f9   :  { %2375 = vmatmul.mubr.msk.f32.gmra.mxu1 %vm57_vm0, %v2707_v18 }
 0x1fa   :  { %2377 = vmatprep.mubr.msk.f32.mxu1 %vm57_vm0, %v2712_v19 }
 0x1fd   :  { %2378 = vmatmul.mubr.msk.f32.gmra.mxu1 %vm57_vm0, %v2721_v20 }
 0x1fe   :  { %v2535_v23 = vpop.eup %2534  ;;  %2380 = vmatprep.mubr.msk.f32.mxu1 %vm57_vm0, %v2726_v21 }
 0x1ff   :  { %v2748_v27 = vmul.f32 %v2535_v23, %v401_v22 }
 0x200   :  { %v2537_v28 = vpop.eup %2536 }
 0x201   :  { %2381 = vmatmul.mubr.msk.f32.gmra.mxu1 %vm57_vm0, %v2738_v24  ;;  %v2755_v30 = vmul.f32 %v2537_v28, %v402_v25 }
 0x202   :  { %v2539_v31 = vpop.eup %2538  ;;  %2383 = vmatprep.mubr.msk.f32.mxu1 %vm57_vm0, %v2746_v26 }
 0x203   :  { %3522 = vst [vmem:[#allocation2_spill] sm:$0xff] %v2755_v30  ;;  %976 = vmatprep.mubr.f32.mxu0 %v2755_v30  ;;  %v2773_v35 = vmul.f32 %v2539_v31, %v403_v29 }
 0x204   :  { %v2541_v36 = vpop.eup %2540 }
 0x205   :  { %2384 = vmatmul.mubr.msk.f32.gmra.mxu1 %vm57_vm0, %v2762_v32  ;;  %v2777_v37 = vmul.f32 %v2541_v36, %v404_v33 }
 0x206   :  { %2386 = vmatprep.mubr.msk.f32.mxu1 %vm57_vm0, %v2771_v34 }
 0x209   :  { %2387 = vmatmul.mubr.msk.f32.gmra.mxu1 %vm57_vm0, %v2784_v38 }
 0x20a   :  { %2389 = vmatprep.mubr.msk.f32.mxu1 %vm57_vm0, %v2789_v39 }
 0x20d   :  { %2390 = vmatmul.mubr.msk.f32.gmra.mxu1 %vm57_vm0, %v2798_v41 }
 0x20e   :  { %2392 = vmatprep.mubr.msk.f32.mxu1 %vm57_vm0, %v2803_v42 }
 0x211   :  { %2393 = vmatmul.mubr.msk.f32.gmra.mxu1 %vm57_vm0, %v2812_v43 }
 0x212   :  { %2395 = vmatprep.mubr.msk.f32.mxu1 %vm57_vm0, %v2817_v44  ;;  %v876_v44 = vld [vmem:[%s3498_s8 + $0xe0] sm:$0xff] }
 0x215   :  { %2396 = vmatmul.mubr.msk.f32.gmra.mxu1 %vm57_vm0, %v2826_v45 }
 0x216   :  { %2398 = vmatprep.mubr.msk.f32.mxu1 %vm57_vm0, %v2831_v47 }
 0x219   :  { %2399 = vmatmul.mubr.msk.f32.gmra.mxu1 %vm57_vm0, %v2840_v48  ;;  %v861_v48 = vld [vmem:[%s3498_s8 + $0x68] sm:$0xff] }
 0x21a   :  { %2401 = vmatprep.mubr.msk.f32.mxu1 %vm57_vm0, %v2845_v50 }
 0x21d   :  { %2402 = vmatmul.mubr.msk.f32.gmra.mxu1 %vm57_vm0, %v2854_v51  ;;  %v877_v51 = vld [vmem:[%s3498_s8 + $0xe8] sm:$0xff] }
 0x21e   :  { %2404 = vmatprep.mubr.msk.f32.mxu1 %vm57_vm0, %v2859_v54 }
 0x221   :  { %2405 = vmatmul.mubr.msk.f32.gmra.mxu1 %vm57_vm0, %v2868_v55 }
 0x222   :  { %2407 = vmatprep.mubr.msk.f32.mxu1 %vm57_vm0, %v2873_v56  ;;  %v862_v56 = vld [vmem:[%s3498_s8 + $0x70] sm:$0xff] }
 0x225   :  { %2408 = vmatmul.mubr.msk.f32.gmra.mxu1 %vm57_vm0, %v2882_v57  ;;  %v878_v57 = vld [vmem:[%s3498_s8 + $0xf0] sm:$0xff] }
 0x226   :  { %2410 = vmatprep.mubr.msk.f32.mxu1 %vm57_vm0, %v2887_v58 }
 0x229   :  { %2411 = vmatmul.mubr.msk.f32.gmra.mxu1 %vm57_vm0, %v2896_v59  ;;  %v863_v59 = vld [vmem:[%s3498_s8 + $0x78] sm:$0xff] }
 0x22a   :  { %2413 = vmatprep.mubr.msk.f32.mxu1 %vm57_vm0, %v2901_v60  ;;  %v879_v60 = vld [vmem:[%s3498_s8 + $0xf8] sm:$0xff] }
 0x22d   :  { %2414 = vmatmul.mubr.msk.f32.gmra.mxu1 %vm57_vm0, %v2910_v61 }
 0x22e   :  { %2416 = vmatprep.mubr.msk.f32.mxu1 %vm57_vm0, %v2915_v62 }
 0x231   :  { %2417 = vmatmul.mubr.msk.f32.gmra.mxu1 %vm57_vm0, %v2924_v63 }
 0x232   :  { %1516 = vmatprep.mubr.f32.mxu1 %v2755_v30 }
 0x2b5   :  { %v2929_v0 = vpop.f32.mrf.mxu1 }
 0x2b7   :  { %v2931_v1 = vpop.f32.mrf.mxu1 }
 0x2b9   :  { %v2933_v2 = vpop.f32.mrf.mxu1 }
 0x2bb   :  { %v2935_v3 = vpop.f32.mrf.mxu1 }
 0x2bd   :  { %v2937_v4 = vpop.f32.mrf.mxu1 }
 0x2bf   :  { %v2939_v5 = vpop.f32.mrf.mxu1 }
 0x2c1   :  { %v2941_v6 = vpop.f32.mrf.mxu1 }
 0x2c3   :  { %v2943_v7 = vpop.f32.mrf.mxu1 }
 0x2c5   :  { %v2945_v8 = vpop.f32.mrf.mxu1 }
 0x2c7   :  { %v2947_v9 = vpop.f32.mrf.mxu1 }
 0x2c9   :  { %v2388_v10 = vpop.f32.mrf.mxu1 }
 0x2cb   :  { %v739_v11 = vpop.f32.mrf.mxu1 }
 0x2cd   :  { %v2391_v12 = vpop.f32.mrf.mxu1 }
 0x2cf   :  { %v749_v14 = vpop.f32.mrf.mxu1 }
 0x2d1   :  { %v2394_v15 = vpop.f32.mrf.mxu1 }
 0x2d2   :  { %v895_v54 = vmul.f32 %v2394_v15, %v863_v59  ;;  %v875_v15 = vld [vmem:[%s3498_s8 + $0xd8] sm:$0xff] }
 0x2d3   :  { %v759_v17 = vpop.f32.mrf.mxu1 }
 0x2d4   :  { %v894_v45 = vmul.f32 %v862_v56, %v759_v17 }
 0x2d5   :  { %v2949_v22 = vpop.f32.mrf.mxu1 }
 0x2d7   :  { %v2951_v23 = vpop.f32.mrf.mxu1 }
 0x2d9   :  { %v2953_v25 = vpop.f32.mrf.mxu1 }
 0x2db   :  { %v2955_v28 = vpop.f32.mrf.mxu1 }
 0x2dd   :  { %v2957_v29 = vpop.f32.mrf.mxu1 }
 0x2df   :  { %v2959_v31 = vpop.f32.mrf.mxu1 }
 0x2e1   :  { %v2406_v33 = vpop.f32.mrf.mxu1 }
 0x2e3   :  { %v2961_v36 = vpop.f32.mrf.mxu1 }
 0x2e5   :  { %v2409_v46 = vpop.f32.mrf.mxu1 }
 0x2e7   :  { %v809_v52 = vpop.f32.mrf.mxu1 }
 0x2e9   :  { %v2412_v30 = vpop.f32.mrf.mxu1 }
 0x2eb   :  { %v819_v63 = vpop.f32.mrf.mxu1 }
 0x2ed   :  { %v2415_v62 = vpop.f32.mrf.mxu1 }
 0x2ee   :  { %v909_v59 = vmul.f32 %v2415_v62, %v877_v51  ;;  %v872_v62 = vld [vmem:[%s3498_s8 + $0xc0] sm:$0xff] }
 0x2ef   :  { %v829_v61 = vpop.f32.mrf.mxu1 }
 0x2f1   :  { %v2418_v58 = vpop.f32.mrf.mxu1 }
 0x2f2   :  { %v911_v55 = vmul.f32 %v2418_v58, %v879_v60  ;;  %v860_v58 = vld [vmem:[%s3498_s8 + $0x60] sm:$0xff]  ;;  %v893_v60 = vmul.f32 %v2391_v12, %v861_v48  ;;  %v907_v48 = vmul.f32 %v2412_v30, %v875_v15 }
 0x2f3   :  { %v839_v50 = vpop.f32.mrf.mxu1  ;;  %v892_v56 = vmul.f32 %v860_v58, %v749_v14  ;;  %v856_v30 = vld [vmem:[%s3498_s8 + $0x40] sm:$0xff]  ;;  %v871_v14 = vld [vmem:[%s3498_s8 + $0xb8] sm:$0xff] }
 0x2f4   :  { %v910_v47 = vmul.f32 %v878_v57, %v839_v50  ;;  %2162 = vmatprep.subr.mxu0 %v911_v55  ;;  %v859_v50 = vld [vmem:[%s3498_s8 + $0x58] sm:$0xff]  ;;  %v908_v55 = vmul.f32 %v876_v44, %v829_v61  ;;  %v857_v44 = vld [vmem:[%s3498_s8 + $0x48] sm:$0xff]  ;;  %v888_v17 = vmul.f32 %v856_v30, %v2947_v9  ;;  %v903_v58 = vmul.f32 %v2406_v33, %v871_v14  ;;  %v868_v33 = vld [vmem:[%s3498_s8 + $0xa0] sm:$0xff] }
 0x2f5   :  { %2163 = vmatpush3.msra.mxu0 %v895_v54  ;;  %v874_v54 = vld [vmem:[%s3498_s8 + $0xd0] sm:$0xff]  ;;  %v891_v51 = vmul.f32 %v2388_v10, %v859_v50  ;;  %v889_v12 = vmul.f32 %v2945_v8, %v857_v44  ;;  %v853_v9 = vld [vmem:[%s3498_s8 + $0x28] sm:$0xff] }
 0x2f6   :  { %2164 = vmatprep.subr.mxu0 %v910_v47  ;;  %v858_v47 = vld [vmem:[%s3498_s8 + $0x50] sm:$0xff]  ;;  %v906_v57 = vmul.f32 %v874_v54, %v819_v63  ;;  %v855_v63 = vld [vmem:[%s3498_s8 + $0x38] sm:$0xff] }
 0x2f7   :  { %2165 = vmatpush3.msra.mxu0 %v894_v45  ;;  %v873_v45 = vld [vmem:[%s3498_s8 + $0xc8] sm:$0xff]  ;;  %v890_v61 = vmul.f32 %v858_v47, %v739_v11  ;;  %v904_v11 = vmul.f32 %v872_v62, %v809_v52  ;;  %v854_v8 = vld [vmem:[%s3498_s8 + $0x30] sm:$0xff] }
 0x2f8   :  { %2166 = vmatprep.subr.mxu0 %v909_v59  ;;  %v905_v10 = vmul.f32 %v2409_v46, %v873_v45  ;;  %v870_v46 = vld [vmem:[%s3498_s8 + $0xb0] sm:$0xff]  ;;  %v887_v59 = vmul.f32 %v2941_v6, %v855_v63  ;;  %v869_v52 = vld [vmem:[%s3498_s8 + $0xa8] sm:$0xff]  ;;  %v886_v15 = vmul.f32 %v854_v8, %v2943_v7  ;;  %v852_v6 = vld [vmem:[%s3498_s8 + $0x20] sm:$0xff] }
 0x2f9   :  { %2167 = vmatpush3.msra.mxu0 %v893_v60  ;;  %v902_v60 = vmul.f32 %v870_v46, %v2961_v36  ;;  %v901_v50 = vmul.f32 %v2957_v29, %v869_v52  ;;  %v867_v36 = vld [vmem:[%s3498_s8 + $0x98] sm:$0xff]  ;;  %v884_v54 = vmul.f32 %v852_v6, %v2939_v5  ;;  %v866_v29 = vld [vmem:[%s3498_s8 + $0x90] sm:$0xff]  ;;  %v849_v5 = vld [vmem:[%s3498_s8 + $0x8] sm:$0xff] }
 0x2fa   :  { %2168 = vmatprep.subr.mxu0 %v908_v55  ;;  %v885_v55 = vmul.f32 %v2937_v4, %v853_v9  ;;  %v851_v7 = vld [vmem:[%s3498_s8 + $0x18] sm:$0xff]  ;;  %v850_v4 = vld [vmem:[%s3498_s8 + $0x10] sm:$0xff]  ;;  %v899_v47 = vmul.f32 %v2953_v25, %v867_v36  ;;  %v864_v25 = vld [vmem:[%s3498_s8 + $0x80] sm:$0xff]  ;;  %v3540_v9 = vmax.f32 %v2656_v40, 0.0 }
 0x2fb   :  { %2169 = vmatpush3.msra.mxu0 %v892_v56  ;;  %v900_v56 = vmul.f32 %v868_v33, %v2959_v31  ;;  %v865_v31 = vld [vmem:[%s3498_s8 + $0x88] sm:$0xff]  ;;  %v882_v45 = vmul.f32 %v850_v4, %v2935_v3  ;;  %v2033_v63 = vld [vmem:[%s3493_s9 + $0x38] sm:$0xff]  ;;  %v2030_v46 = vld [vmem:[%s3493_s9 + $0x20] sm:$0xff] }
 0x2fc   :  { %2170 = vmatprep.subr.mxu0 %v907_v48  ;;  %v883_v48 = vmul.f32 %v2933_v2, %v851_v7  ;;  %v848_v2 = vld [vmem:[%s3498_s8] sm:$0xff]  ;;  %v897_v44 = vmul.f32 %v2949_v22, %v865_v31  ;;  %v990_v22 = vld [vmem:[%s3499_s10 + $0x18] sm:$0xff] }
 0x2fd   :  { %2171 = vmatpush3.msra.mxu0 %v891_v51  ;;  %v898_v51 = vmul.f32 %v866_v29, %v2955_v28  ;;  %v896_v28 = vmul.f32 %v864_v25, %v2951_v23  ;;  %v880_v3 = vmul.f32 %v848_v2, %v2931_v1  ;;  %v988_v1 = vld [vmem:[%s3499_s10 + $0x8] sm:$0xff]  ;;  %v987_v23 = vld [vmem:[%s3499_s10] sm:$0xff] }
 0x2fe   :  { %2172 = vmatprep.subr.mxu0 %v906_v57  ;;  %v881_v57 = vmul.f32 %v2929_v0, %v849_v5  ;;  %v989_v0 = vld [vmem:[%s3499_s10 + $0x10] sm:$0xff] }
 0x2ff   :  { %2173 = vmatpush3.msra.mxu0 %v890_v61 }
 0x300   :  { %2174 = vmatprep.subr.mxu0 %v905_v10 }
 0x301   :  { %2175 = vmatpush3.msra.mxu0 %v889_v12 }
 0x302   :  { %2176 = vmatprep.subr.mxu0 %v904_v11  ;;  %v2032_v11 = vld [vmem:[%s3493_s9 + $0x30] sm:$0xff] }
 0x303   :  { %2177 = vmatpush3.msra.mxu0 %v888_v17  ;;  %v2031_v17 = vld [vmem:[%s3493_s9 + $0x28] sm:$0xff] }
 0x304   :  { %2178 = vmatprep.subr.mxu0 %v903_v58  ;;  %v3539_v58 = vmax.f32 %v2666_v49, 0.0 }
 0x305   :  { %2179 = vmatpush3.msra.mxu0 %v887_v59 }
 0x306   :  { %2180 = vmatprep.subr.mxu0 %v902_v60 }
 0x307   :  { %2181 = vmatpush3.msra.mxu0 %v886_v15 }
 0x308   :  { %2182 = vmatprep.subr.mxu0 %v901_v50 }
 0x309   :  { %2183 = vmatpush3.msra.mxu0 %v885_v55 }
 0x30a   :  { %2184 = vmatprep.subr.mxu0 %v900_v56 }
 0x30b   :  { %2185 = vmatpush3.msra.mxu0 %v884_v54 }
 0x30c   :  { %2186 = vmatprep.subr.mxu0 %v899_v47 }
 0x30d   :  { %2187 = vmatpush3.msra.mxu0 %v883_v48 }
 0x30e   :  { %2188 = vmatprep.subr.mxu0 %v898_v51 }
 0x30f   :  { %2189 = vmatpush3.msra.mxu0 %v882_v45 }
 0x310   :  { %2190 = vmatprep.subr.mxu0 %v897_v44 }
 0x311   :  { %2191 = vmatpush3.msra.mxu0 %v881_v57 }
 0x312   :  { %2192 = vmatprep.subr.mxu0 %v896_v28 }
 0x313   :  { %2193 = vmatpush3.msra.mxu0 %v880_v3 }
 0x314   :  { %977 = vmatmul.mubr.f32.vlgmr.msra.gmra.mxu0 %v2748_v27  ;;  %2419 = vmatprep.subr.mxu0 %v990_v22 }
 0x315   :  { %981 = vmatprep.mubr.f32.mxu0 %v2777_v37  ;;  %2420 = vmatpush3.msra.mxu0 %v990_v22 }
 0x316   :  { %2421 = vmatprep.subr.mxu0 %v989_v0 }
 0x317   :  { %2422 = vmatpush3.msra.mxu0 %v989_v0 }
 0x318   :  { %982 = vmatmul.mubr.f32.gmra.mxu0 %v2773_v35  ;;  %2423 = vmatprep.subr.mxu0 %v988_v1 }
 0x319   :  { %2424 = vmatpush3.msra.mxu0 %v988_v1 }
 0x31a   :  { %2425 = vmatprep.subr.mxu0 %v987_v23 }
 0x31b   :  { %2426 = vmatpush3.msra.mxu0 %v987_v23 }
 0x31c   :  { %2430 = vmatprep.subr.mxu0 %v2033_v63 }
 0x3d4   :  { %v2194_v61 = vpop.f32.mrf.mxu0 }
 0x3d6   :  { %v2195_v62 = vpop.f32.mrf.mxu0 }
 0x3d7   :  { %v2196_v30 = vadd.f32 %v2195_v62, %v2194_v61 }
 0x3d8   :  { %v2197_v10 = vpop.f32.mrf.mxu0 }
 0x3d9   :  { %2427 = vmatprep.mubr.msk.f32.mxu0 %vm413_vm5, %v2196_v30 }
 0x3da   :  { %v2198_v12 = vpop.f32.mrf.mxu0 }
 0x3db   :  { %v2199_v14 = vadd.f32 %v2198_v12, %v2197_v10 }
 0x3dd   :  { %2428 = vmatmul.mubr.msk.f32.vlgmr.msra.gmra.mxu0 %vm413_vm5, %v2199_v14  ;;  %v2099_v14 = vld [vmem:[%s3498_s8 + $0x1f8] sm:$0xff] }
 0x3de   :  { %2431 = vmatpush3.msra.mxu0 %v2033_v63  ;;  %v2083_v63 = vld [vmem:[%s3498_s8 + $0x178] sm:$0xff] }
 0x3df   :  { %2432 = vmatprep.subr.mxu0 %v2032_v11 }
 0x3e0   :  { %2433 = vmatpush3.msra.mxu0 %v2032_v11 }
 0x3e1   :  { %2434 = vmatprep.subr.mxu0 %v2031_v17 }
 0x3e2   :  { %2435 = vmatpush3.msra.mxu0 %v2031_v17  ;;  %v2098_v17 = vld [vmem:[%s3498_s8 + $0x1f0] sm:$0xff] }
 0x3e3   :  { %2436 = vmatprep.subr.mxu0 %v2030_v46 }
 0x3e4   :  { %2437 = vmatpush3.msra.mxu0 %v2030_v46  ;;  %v2082_v46 = vld [vmem:[%s3498_s8 + $0x170] sm:$0xff] }
 0x49d   :  { %v2429_v8 = vpop.f32.mrf.mxu0 }
 0x49e   :  { %v3107_v59 = vadd.f32 %v2429_v8, %v3539_v58 }
 0x49f   :  { %v1063_v52 = vpop.f32.mrf.mxu0 }
 0x4a0   :  { %v3111_v60 = vadd.f32 %v1063_v52, %v3540_v9  ;;  %v1075_v33 = vmax.f32 %v3107_v59, 0.0  ;;  %v2097_v52 = vld [vmem:[%s3498_s8 + $0x1e8] sm:$0xff] }
 0x4a2   :  { %v1074_v15 = vmax.f32 %v3111_v60, 0.0 }
 0x4a4   :  { %2438 = vmatprep.mubr.msk.f32.mxu0 %vm413_vm5, %v1074_v15 }
 0x4a5   :  { %2439 = vmatmul.mubr.msk.f32.vlgmr.msra.gmra.mxu0 %vm413_vm5, %v1075_v33 }
 0x4a6   :  { %2445 = vmatprep.mubr.msk.f32.mxu0 %vm57_vm0, %v2682_v53  ;;  %v3541_v53 = vld [vmem:[#allocation3_spill] sm:$0xff] }
 0x565   :  { %v2440_v49 = vpop.f32.mrf.mxu0 }
 0x566   :  { %2441 = vmatprep.subr.mxu0 %v2440_v49 }
 0x567   :  { %v1153_v40 = vpop.f32.mrf.mxu0  ;;  %2442 = vmatpush3.msra.mxu0 %v2440_v49  ;;  %v2081_v49 = vld [vmem:[%s3498_s8 + $0x168] sm:$0xff] }
 0x568   :  { %2443 = vmatprep.subr.mxu0 %v1153_v40 }
 0x569   :  { %2444 = vmatpush3.msra.mxu0 %v1153_v40 }
 0x56a   :  { %2446 = vmatmul.mubr.msk.f32.vlgmr.msra.gmra.mxu0 %vm57_vm0, %v2693_v13  ;;  %v3542_v13 = vld [vmem:[#allocation4_spill] sm:$0xff] }
 0x56b   :  { %2448 = vmatprep.mubr.msk.f32.mxu0 %vm57_vm0, %v2698_v16  ;;  %v3543_v16 = vld [vmem:[#allocation5_spill] sm:$0xff] }
 0x56e   :  { %2449 = vmatmul.mubr.msk.f32.gmra.mxu0 %vm57_vm0, %v2707_v18  ;;  %v3544_v18 = vld [vmem:[#allocation6_spill] sm:$0xff] }
 0x56f   :  { %2451 = vmatprep.mubr.msk.f32.mxu0 %vm57_vm0, %v2712_v19  ;;  %v3545_v19 = vld [vmem:[#allocation7_spill] sm:$0xff] }
 0x572   :  { %2452 = vmatmul.mubr.msk.f32.gmra.mxu0 %vm57_vm0, %v2721_v20  ;;  %v3546_v20 = vld [vmem:[#allocation8_spill] sm:$0xff] }
 0x573   :  { %2454 = vmatprep.mubr.msk.f32.mxu0 %vm57_vm0, %v2726_v21  ;;  %v3547_v21 = vld [vmem:[#allocation9_spill] sm:$0xff] }
 0x576   :  { %2455 = vmatmul.mubr.msk.f32.gmra.mxu0 %vm57_vm0, %v2738_v24  ;;  %v3548_v24 = vld [vmem:[#allocation10_spill] sm:$0xff] }
 0x577   :  { %2457 = vmatprep.mubr.msk.f32.mxu0 %vm57_vm0, %v2746_v26  ;;  %v3549_v26 = vld [vmem:[#allocation11_spill] sm:$0xff] }
 0x57a   :  { %2458 = vmatmul.mubr.msk.f32.gmra.mxu0 %vm57_vm0, %v2762_v32  ;;  %v3550_v32 = vld [vmem:[#allocation12_spill] sm:$0xff] }
 0x57b   :  { %2460 = vmatprep.mubr.msk.f32.mxu0 %vm57_vm0, %v2771_v34  ;;  %v3551_v34 = vld [vmem:[#allocation13_spill] sm:$0xff] }
 0x57e   :  { %2461 = vmatmul.mubr.msk.f32.gmra.mxu0 %vm57_vm0, %v2784_v38  ;;  %v3552_v38 = vld [vmem:[#allocation14_spill] sm:$0xff] }
 0x57f   :  { %2463 = vmatprep.mubr.msk.f32.mxu0 %vm57_vm0, %v2789_v39  ;;  %v3553_v39 = vld [vmem:[#allocation15_spill] sm:$0xff] }
 0x582   :  { %2464 = vmatmul.mubr.msk.f32.gmra.mxu0 %vm57_vm0, %v2798_v41  ;;  %v3554_v41 = vld [vmem:[#allocation16_spill] sm:$0xff] }
 0x583   :  { %2466 = vmatprep.mubr.msk.f32.mxu0 %vm57_vm0, %v2803_v42  ;;  %v3555_v42 = vld [vmem:[#allocation17_spill] sm:$0xff] }
 0x586   :  { %2467 = vmatmul.mubr.msk.f32.gmra.mxu0 %vm57_vm0, %v2812_v43  ;;  %v3556_v43 = vld [vmem:[#allocation18_spill] sm:$0xff] }
 0x587   :  { %2469 = vmatprep.mubr.msk.f32.mxu0 %vm57_vm0, %v3541_v53 }
 0x58a   :  { %2470 = vmatmul.mubr.msk.f32.gmra.mxu0 %vm57_vm0, %v3542_v13  ;;  %v2096_v13 = vld [vmem:[%s3498_s8 + $0x1e0] sm:$0xff] }
 0x58b   :  { %2472 = vmatprep.mubr.msk.f32.mxu0 %vm57_vm0, %v3543_v16  ;;  %v2080_v16 = vld [vmem:[%s3498_s8 + $0x160] sm:$0xff] }
 0x58e   :  { %2473 = vmatmul.mubr.msk.f32.gmra.mxu0 %vm57_vm0, %v3544_v18 }
 0x58f   :  { %2475 = vmatprep.mubr.msk.f32.mxu0 %vm57_vm0, %v3545_v19 }
 0x592   :  { %2476 = vmatmul.mubr.msk.f32.gmra.mxu0 %vm57_vm0, %v3546_v20  ;;  %v2095_v20 = vld [vmem:[%s3498_s8 + $0x1d8] sm:$0xff] }
 0x593   :  { %2478 = vmatprep.mubr.msk.f32.mxu0 %vm57_vm0, %v3547_v21  ;;  %v2079_v21 = vld [vmem:[%s3498_s8 + $0x158] sm:$0xff] }
 0x596   :  { %2479 = vmatmul.mubr.msk.f32.gmra.mxu0 %vm57_vm0, %v3548_v24 }
 0x597   :  { %2481 = vmatprep.mubr.msk.f32.mxu0 %vm57_vm0, %v3549_v26 }
 0x59a   :  { %2482 = vmatmul.mubr.msk.f32.gmra.mxu0 %vm57_vm0, %v3550_v32  ;;  %v2094_v32 = vld [vmem:[%s3498_s8 + $0x1d0] sm:$0xff] }
 0x59b   :  { %2484 = vmatprep.mubr.msk.f32.mxu0 %vm57_vm0, %v3551_v34  ;;  %v2078_v34 = vld [vmem:[%s3498_s8 + $0x150] sm:$0xff] }
 0x59e   :  { %2485 = vmatmul.mubr.msk.f32.gmra.mxu0 %vm57_vm0, %v3552_v38 }
 0x59f   :  { %2487 = vmatprep.mubr.msk.f32.mxu0 %vm57_vm0, %v3553_v39 }
 0x5a2   :  { %2488 = vmatmul.mubr.msk.f32.gmra.mxu0 %vm57_vm0, %v3554_v41  ;;  %v2093_v41 = vld [vmem:[%s3498_s8 + $0x1c8] sm:$0xff] }
 0x5a3   :  { %2490 = vmatprep.mubr.msk.f32.mxu0 %vm57_vm0, %v3555_v42  ;;  %v2077_v42 = vld [vmem:[%s3498_s8 + $0x148] sm:$0xff] }
 0x5a6   :  { %2491 = vmatmul.mubr.msk.f32.gmra.mxu0 %vm57_vm0, %v3556_v43 }
 0x62a   :  { %v3185_v6 = vpop.f32.mrf.mxu0 }
 0x62c   :  { %v3187_v50 = vpop.f32.mrf.mxu0 }
 0x62e   :  { %v3189_v55 = vpop.f32.mrf.mxu0 }
 0x630   :  { %v3191_v36 = vpop.f32.mrf.mxu0 }
 0x632   :  { %v3193_v7 = vpop.f32.mrf.mxu0 }
 0x634   :  { %v3195_v56 = vpop.f32.mrf.mxu0 }
 0x636   :  { %v3197_v54 = vpop.f32.mrf.mxu0 }
 0x638   :  { %v3199_v29 = vpop.f32.mrf.mxu0 }
 0x63a   :  { %v3201_v4 = vpop.f32.mrf.mxu0 }
 0x63c   :  { %v3203_v47 = vpop.f32.mrf.mxu0 }
 0x63e   :  { %v2462_v48 = vpop.f32.mrf.mxu0 }
 0x63f   :  { %v1431_v39 = vmul.f32 %v2462_v48, %v2079_v21  ;;  %v2076_v48 = vld [vmem:[%s3498_s8 + $0x140] sm:$0xff] }
 0x640   :  { %v1278_v31 = vpop.f32.mrf.mxu0 }
 0x642   :  { %v2465_v5 = vpop.f32.mrf.mxu0 }
 0x643   :  { %v1433_v19 = vmul.f32 %v2465_v5, %v2081_v49  ;;  %v1430_v5 = vmul.f32 %v2078_v34, %v1278_v31  ;;  %v2075_v31 = vld [vmem:[%s3498_s8 + $0x138] sm:$0xff]  ;;  %v1647_v34 = vld [vmem:[%s3500_s11 + $0xf0] sm:$0xff] }
 0x644   :  { %v1288_v51 = vpop.f32.mrf.mxu0 }
 0x645   :  { %v1432_v26 = vmul.f32 %v2080_v16, %v1288_v51  ;;  %v2092_v51 = vld [vmem:[%s3498_s8 + $0x1c0] sm:$0xff]  ;;  %v1648_v16 = vld [vmem:[%s3500_s11 + $0xf8] sm:$0xff] }
 0x646   :  { %v2468_v45 = vpop.f32.mrf.mxu0 }
 0x647   :  { %v1435_v58 = vmul.f32 %v2468_v45, %v2083_v63 }
 0x648   :  { %v1298_v25 = vpop.f32.mrf.mxu0 }
 0x649   :  { %v1434_v53 = vmul.f32 %v2082_v46, %v1298_v25  ;;  %v1429_v25 = vmul.f32 %v3201_v4, %v2077_v42  ;;  %v2074_v4 = vld [vmem:[%s3498_s8 + $0x130] sm:$0xff]  ;;  %v1630_v42 = vld [vmem:[%s3500_s11 + $0x68] sm:$0xff] }
 0x64a   :  { %v3205_v2 = vpop.f32.mrf.mxu0 }
 0x64c   :  { %v3207_v44 = vpop.f32.mrf.mxu0 }
 0x64e   :  { %v3209_v57 = vpop.f32.mrf.mxu0 }
 0x650   :  { %v3211_v28 = vpop.f32.mrf.mxu0 }
 0x652   :  { %v3213_v3 = vpop.f32.mrf.mxu0 }
 0x654   :  { %v3215_v22 = vpop.f32.mrf.mxu0 }
 0x656   :  { %v2480_v0 = vpop.f32.mrf.mxu0 }
 0x658   :  { %v3217_v1 = vpop.f32.mrf.mxu0 }
 0x65a   :  { %v2483_v23 = vpop.f32.mrf.mxu0 }
 0x65b   :  { %v1445_v45 = vmul.f32 %v2483_v23, %v2093_v41  ;;  %v2090_v23 = vld [vmem:[%s3498_s8 + $0x1b0] sm:$0xff]  ;;  %v1646_v41 = vld [vmem:[%s3500_s11 + $0xe8] sm:$0xff] }
 0x65c   :  { %v1348_v61 = vpop.f32.mrf.mxu0  ;;  %v1442_v63 = vmul.f32 %v2090_v23, %v3217_v1  ;;  %v2087_v1 = vld [vmem:[%s3498_s8 + $0x198] sm:$0xff] }
 0x65d   :  { %v1640_v23 = vld [vmem:[%s3500_s11 + $0xb8] sm:$0xff] }
 0x65e   :  { %v2486_v62 = vpop.f32.mrf.mxu0 }
 0x65f   :  { %v1447_v38 = vmul.f32 %v2486_v62, %v2095_v20  ;;  %v2091_v62 = vld [vmem:[%s3498_s8 + $0x1b8] sm:$0xff] }
 0x660   :  { %v1358_v30 = vpop.f32.mrf.mxu0 }
 0x661   :  { %v1446_v43 = vmul.f32 %v2094_v32, %v1358_v30  ;;  %v1444_v30 = vmul.f32 %v2092_v51, %v1348_v61  ;;  %v2089_v61 = vld [vmem:[%s3498_s8 + $0x1a8] sm:$0xff]  ;;  %v1632_v32 = vld [vmem:[%s3500_s11 + $0x78] sm:$0xff] }
 0x662   :  { %v2489_v10 = vpop.f32.mrf.mxu0  ;;  %v1644_v51 = vld [vmem:[%s3500_s11 + $0xd8] sm:$0xff] }
 0x663   :  { %v1449_v18 = vmul.f32 %v2489_v10, %v2097_v52  ;;  %v1428_v10 = vmul.f32 %v2076_v48, %v3203_v47  ;;  %v2073_v47 = vld [vmem:[%s3498_s8 + $0x128] sm:$0xff]  ;;  %v1439_v52 = vmul.f32 %v3209_v57, %v2087_v1  ;;  %v2084_v57 = vld [vmem:[%s3498_s8 + $0x180] sm:$0xff]  ;;  %v1628_v48 = vld [vmem:[%s3500_s11 + $0x58] sm:$0xff] }
 0x664   :  { %v1368_v12 = vpop.f32.mrf.mxu0  ;;  %v1425_v46 = vmul.f32 %v3193_v7, %v2073_v47  ;;  %v2070_v7 = vld [vmem:[%s3498_s8 + $0x110] sm:$0xff]  ;;  %v1622_v47 = vld [vmem:[%s3500_s11 + $0x28] sm:$0xff] }
 0x665   :  { %v1448_v24 = vmul.f32 %v2096_v13, %v1368_v12  ;;  %v1443_v12 = vmul.f32 %v2480_v0, %v2091_v62  ;;  %v2088_v0 = vld [vmem:[%s3498_s8 + $0x1a0] sm:$0xff]  ;;  %v1642_v62 = vld [vmem:[%s3500_s11 + $0xc8] sm:$0xff] }
 0x666   :  { %v2492_v11 = vpop.f32.mrf.mxu0  ;;  %v1634_v1 = vld [vmem:[%s3500_s11 + $0x88] sm:$0xff] }
 0x667   :  { %v1451_v8 = vmul.f32 %v2492_v11, %v2099_v14  ;;  %v1427_v14 = vmul.f32 %v3197_v54, %v2075_v31  ;;  %v1426_v11 = vmul.f32 %v2074_v4, %v3199_v29  ;;  %v2072_v54 = vld [vmem:[%s3498_s8 + $0x120] sm:$0xff]  ;;  %v2071_v29 = vld [vmem:[%s3498_s8 + $0x118] sm:$0xff]  ;;  %v1626_v31 = vld [vmem:[%s3500_s11 + $0x48] sm:$0xff] }
 0x668   :  { %v1378_v9 = vpop.f32.mrf.mxu0  ;;  %v1624_v4 = vld [vmem:[%s3500_s11 + $0x38] sm:$0xff] }
 0x669   :  { %v1450_v40 = vmul.f32 %v2098_v17, %v1378_v9  ;;  %2246 = vmatprep.subr.mxu1 %v1451_v8  ;;  %v1441_v17 = vmul.f32 %v3213_v3, %v2089_v61  ;;  %v1440_v8 = vmul.f32 %v2088_v0, %v3215_v22  ;;  %v2086_v3 = vld [vmem:[%s3498_s8 + $0x190] sm:$0xff]  ;;  %v1423_v9 = vmul.f32 %v3189_v55, %v2071_v29  ;;  %v2085_v22 = vld [vmem:[%s3498_s8 + $0x188] sm:$0xff]  ;;  %v2068_v55 = vld [vmem:[%s3498_s8 + $0x100] sm:$0xff] }
 0x66a   :  { %2247 = vmatpush3.msra.mxu1 %v1435_v58  ;;  %v1424_v58 = vmul.f32 %v2072_v54, %v3195_v56  ;;  %v2069_v56 = vld [vmem:[%s3498_s8 + $0x108] sm:$0xff]  ;;  %v1438_v49 = vmul.f32 %v2086_v3, %v3211_v28  ;;  %v1436_v28 = vmul.f32 %v2084_v57, %v3207_v44  ;;  %v2100_v44 = vld [vmem:[%s3499_s10 + $0x20] sm:$0xff]  ;;  %v1636_v0 = vld [vmem:[%s3500_s11 + $0x98] sm:$0xff] }
 0x66b   :  { %2248 = vmatprep.subr.mxu1 %v1450_v40  ;;  %v1422_v40 = vmul.f32 %v2070_v7, %v3191_v36  ;;  %v1421_v13 = vmul.f32 %v3185_v6, %v2069_v56  ;;  %v1420_v36 = vmul.f32 %v2068_v55, %v3187_v50  ;;  %v2102_v6 = vld [vmem:[%s3499_s10 + $0x30] sm:$0xff]  ;;  %v2101_v50 = vld [vmem:[%s3499_s10 + $0x28] sm:$0xff]  ;;  %v1620_v54 = vld [vmem:[%s3500_s11 + $0x18] sm:$0xff] }
 0x66c   :  { %2249 = vmatpush3.msra.mxu1 %v1434_v53  ;;  %v1437_v53 = vmul.f32 %v3205_v2, %v2085_v22  ;;  %v2103_v2 = vld [vmem:[%s3499_s10 + $0x38] sm:$0xff]  ;;  %v1638_v61 = vld [vmem:[%s3500_s11 + $0xa8] sm:$0xff]  ;;  %v1726_v7 = vld [vmem:[%s3501_s12 + $0x10] sm:$0xff] }
 0x66d   :  { %2250 = vmatprep.subr.mxu1 %v1449_v18  ;;  %v1618_v29 = vld [vmem:[%s3500_s11 + $0x8] sm:$0xff]  ;;  %v1727_v3 = vld [vmem:[%s3501_s12 + $0x18] sm:$0xff]  ;;  %v2543_v57 = vld [vmem:[%s3489_s0] sm:$0xff] }
 0x66e   :  { %2251 = vmatpush3.msra.mxu1 %v1433_v19 }
 0x66f   :  { %2252 = vmatprep.subr.mxu1 %v1448_v24 }
 0x670   :  { %2253 = vmatpush3.msra.mxu1 %v1432_v26 }
 0x671   :  { %2254 = vmatprep.subr.mxu1 %v1447_v38  ;;  %v1631_v38 = vld [vmem:[%s3500_s11 + $0x70] sm:$0xff] }
 0x672   :  { %2255 = vmatpush3.msra.mxu1 %v1431_v39  ;;  %v3557_v39 = vld [vmem:[#allocation2_spill] sm:$0xff] }
 0x673   :  { %2256 = vmatprep.subr.mxu1 %v1446_v43  ;;  %v1645_v43 = vld [vmem:[%s3500_s11 + $0xe0] sm:$0xff] }
 0x674   :  { %2257 = vmatpush3.msra.mxu1 %v1430_v5  ;;  %v1629_v5 = vld [vmem:[%s3500_s11 + $0x60] sm:$0xff] }
 0x675   :  { %2258 = vmatprep.subr.mxu1 %v1445_v45  ;;  %v1643_v45 = vld [vmem:[%s3500_s11 + $0xd0] sm:$0xff] }
 0x676   :  { %2259 = vmatpush3.msra.mxu1 %v1429_v25  ;;  %v1627_v25 = vld [vmem:[%s3500_s11 + $0x50] sm:$0xff] }
 0x677   :  { %2260 = vmatprep.subr.mxu1 %v1444_v30  ;;  %v1641_v30 = vld [vmem:[%s3500_s11 + $0xc0] sm:$0xff] }
 0x678   :  { %2261 = vmatpush3.msra.mxu1 %v1428_v10  ;;  %v1625_v10 = vld [vmem:[%s3500_s11 + $0x40] sm:$0xff] }
 0x679   :  { %2262 = vmatprep.subr.mxu1 %v1443_v12  ;;  %v1639_v12 = vld [vmem:[%s3500_s11 + $0xb0] sm:$0xff] }
 0x67a   :  { %2263 = vmatpush3.msra.mxu1 %v1427_v14  ;;  %v1623_v14 = vld [vmem:[%s3500_s11 + $0x30] sm:$0xff] }
 0x67b   :  { %2264 = vmatprep.subr.mxu1 %v1442_v63  ;;  %v1637_v63 = vld [vmem:[%s3500_s11 + $0xa0] sm:$0xff] }
 0x67c   :  { %2265 = vmatpush3.msra.mxu1 %v1426_v11  ;;  %v1621_v11 = vld [vmem:[%s3500_s11 + $0x20] sm:$0xff] }
 0x67d   :  { %2266 = vmatprep.subr.mxu1 %v1441_v17  ;;  %v1635_v17 = vld [vmem:[%s3500_s11 + $0x90] sm:$0xff] }
 0x67e   :  { %2267 = vmatpush3.msra.mxu1 %v1425_v46  ;;  %v1619_v46 = vld [vmem:[%s3500_s11 + $0x10] sm:$0xff] }
 0x67f   :  { %2268 = vmatprep.subr.mxu1 %v1440_v8  ;;  %v1633_v8 = vld [vmem:[%s3500_s11 + $0x80] sm:$0xff] }
 0x680   :  { %2269 = vmatpush3.msra.mxu1 %v1424_v58  ;;  %v1617_v58 = vld [vmem:[%s3500_s11] sm:$0xff] }
 0x681   :  { %2270 = vmatprep.subr.mxu1 %v1439_v52 }
 0x682   :  { %2271 = vmatpush3.msra.mxu1 %v1423_v9 }
 0x683   :  { %2272 = vmatprep.subr.mxu1 %v1438_v49 }
 0x684   :  { %2273 = vmatpush3.msra.mxu1 %v1422_v40 }
 0x685   :  { %2274 = vmatprep.subr.mxu1 %v1437_v53 }
 0x686   :  { %2275 = vmatpush3.msra.mxu1 %v1421_v13 }
 0x687   :  { %2276 = vmatprep.subr.mxu1 %v1436_v28 }
 0x688   :  { %2277 = vmatpush3.msra.mxu1 %v1420_v36 }
 0x689   :  { %1517 = vmatmul.mubr.f32.vlgmr.msra.gmra.mxu1 %v2748_v27  ;;  %2493 = vmatprep.subr.mxu1 %v2103_v2 }
 0x68a   :  { %1521 = vmatprep.mubr.f32.mxu1 %v2777_v37  ;;  %2494 = vmatpush3.msra.mxu1 %v2103_v2 }
 0x68b   :  { %2495 = vmatprep.subr.mxu1 %v2102_v6 }
 0x68c   :  { %2496 = vmatpush3.msra.mxu1 %v2102_v6 }
 0x68d   :  { %1522 = vmatmul.mubr.f32.gmra.mxu1 %v2773_v35  ;;  %2497 = vmatprep.subr.mxu1 %v2101_v50 }
 0x68e   :  { %2498 = vmatpush3.msra.mxu1 %v2101_v50 }
 0x68f   :  { %2499 = vmatprep.subr.mxu1 %v2100_v44 }
 0x690   :  { %2500 = vmatpush3.msra.mxu1 %v2100_v44 }
 0x691   :  { %2290 = vmatprep.subr.mxu1 %v1648_v16 }
 0x749   :  { %v2278_v18 = vpop.f32.mrf.mxu1 }
 0x74b   :  { %v2279_v19 = vpop.f32.mrf.mxu1 }
 0x74c   :  { %v2280_v20 = vadd.f32 %v2279_v19, %v2278_v18 }
 0x74d   :  { %v2281_v21 = vpop.f32.mrf.mxu1 }
 0x74e   :  { %2501 = vmatprep.mubr.msk.f32.mxu1 %vm413_vm5, %v2280_v20 }
 0x74f   :  { %v2282_v24 = vpop.f32.mrf.mxu1 }
 0x750   :  { %v2283_v26 = vadd.f32 %v2282_v24, %v2281_v21 }
 0x752   :  { %2502 = vmatmul.mubr.msk.f32.vlgmr.msra.gmra.mxu1 %vm413_vm5, %v2283_v26 }
 0x753   :  { %2291 = vmatpush3.msra.mxu1 %v1632_v32  ;;  %1713 = vmatprep.mubr.f32.mxu1 %v3557_v39 }
 0x754   :  { %2292 = vmatprep.subr.mxu1 %v1647_v34 }
 0x755   :  { %2293 = vmatpush3.msra.mxu1 %v1631_v38 }
 0x756   :  { %2294 = vmatprep.subr.mxu1 %v1646_v41 }
 0x757   :  { %2295 = vmatpush3.msra.mxu1 %v1630_v42 }
 0x758   :  { %2296 = vmatprep.subr.mxu1 %v1645_v43 }
 0x759   :  { %2297 = vmatpush3.msra.mxu1 %v1629_v5 }
 0x75a   :  { %2298 = vmatprep.subr.mxu1 %v1644_v51 }
 0x75b   :  { %2299 = vmatpush3.msra.mxu1 %v1628_v48 }
 0x75c   :  { %2300 = vmatprep.subr.mxu1 %v1643_v45 }
 0x75d   :  { %2301 = vmatpush3.msra.mxu1 %v1627_v25 }
 0x75e   :  { %2302 = vmatprep.subr.mxu1 %v1642_v62 }
 0x75f   :  { %2303 = vmatpush3.msra.mxu1 %v1626_v31 }
 0x760   :  { %2304 = vmatprep.subr.mxu1 %v1641_v30 }
 0x761   :  { %2305 = vmatpush3.msra.mxu1 %v1625_v10 }
 0x762   :  { %2306 = vmatprep.subr.mxu1 %v1640_v23 }
 0x763   :  { %2307 = vmatpush3.msra.mxu1 %v1624_v4 }
 0x764   :  { %2308 = vmatprep.subr.mxu1 %v1639_v12 }
 0x765   :  { %2309 = vmatpush3.msra.mxu1 %v1623_v14 }
 0x766   :  { %2310 = vmatprep.subr.mxu1 %v1638_v61 }
 0x767   :  { %2311 = vmatpush3.msra.mxu1 %v1622_v47 }
 0x768   :  { %2312 = vmatprep.subr.mxu1 %v1637_v63 }
 0x769   :  { %2313 = vmatpush3.msra.mxu1 %v1621_v11 }
 0x76a   :  { %2314 = vmatprep.subr.mxu1 %v1636_v0 }
 0x76b   :  { %2315 = vmatpush3.msra.mxu1 %v1620_v54 }
 0x76c   :  { %2316 = vmatprep.subr.mxu1 %v1635_v17 }
 0x76d   :  { %2317 = vmatpush3.msra.mxu1 %v1619_v46 }
 0x76e   :  { %2318 = vmatprep.subr.mxu1 %v1634_v1 }
 0x76f   :  { %2319 = vmatpush3.msra.mxu1 %v1618_v29 }
 0x770   :  { %2320 = vmatprep.subr.mxu1 %v1633_v8 }
 0x771   :  { %2321 = vmatpush3.msra.mxu1 %v1617_v58 }
 0x772   :  { %1714 = vmatmul.mubr.f32.vlgmr.msra.gmra.mxu1 %v2748_v27  ;;  %2504 = vmatprep.subr.mxu1 %v1727_v3  ;;  %v1725_v27 = vld [vmem:[%s3501_s12 + $0x8] sm:$0xff] }
 0x773   :  { %1718 = vmatprep.mubr.f32.mxu1 %v2777_v37  ;;  %2505 = vmatpush3.msra.mxu1 %v1727_v3  ;;  %v2542_v37 = vld [vmem:[%s3489_s0 + $0x8] sm:$0xff] }
 0x774   :  { %2506 = vmatprep.subr.mxu1 %v1726_v7 }
 0x775   :  { %2507 = vmatpush3.msra.mxu1 %v1726_v7 }
 0x776   :  { %1719 = vmatmul.mubr.f32.gmra.mxu1 %v2773_v35  ;;  %2508 = vmatprep.subr.mxu1 %v1725_v27  ;;  %v1724_v35 = vld [vmem:[%s3501_s12] sm:$0xff] }
 0x777   :  { %2509 = vmatpush3.msra.mxu1 %v1725_v27 }
 0x778   :  { %2510 = vmatprep.subr.mxu1 %v1724_v35 }
 0x779   :  { %2511 = vmatpush3.msra.mxu1 %v1724_v35 }
 0x77a   :  { %2522 = vmatprep.subr.mxu1 %v2542_v37 }
 0x812   :  { %v2503_v52 = vpop.f32.mrf.mxu1 }
 0x813   :  { %v1614_v9 = vadd.f32 %v2503_v52, %v1075_v33 }
 0x814   :  { %v1604_v22 = vpop.f32.mrf.mxu1 }
 0x815   :  { %v1613_v56 = vadd.f32 %v1604_v22, %v1074_v15  ;;  %v1616_v40 = vmax.f32 %v1614_v9, 0.0 }
 0x817   :  { %v1615_v49 = vmax.f32 %v1613_v56, 0.0 }
 0x819   :  { %2512 = vmatprep.mubr.msk.f32.mxu1 %vm413_vm5, %v1615_v49  ;;  %2519 = vmatprep.mubr.msk.f32.mxu0 %vm413_vm5, %v1615_v49 }
 0x81a   :  { %2513 = vmatmul.mubr.msk.f32.vlgmr.msra.gmra.mxu1 %vm413_vm5, %v1616_v40 }
 0x81b   :  { %2523 = vmatpush3.msra.mxu1 %v2542_v37 }
 0x81c   :  { %2524 = vmatprep.subr.mxu1 %v2543_v57 }
 0x81d   :  { %2525 = vmatpush3.msra.mxu1 %v2543_v57 }
 0x832   :  { %v2322_v59 = vpop.f32.mrf.mxu1 }
 0x834   :  { %v2323_v33 = vpop.f32.mrf.mxu1 }
 0x835   :  { %v2324_v55 = vadd.f32 %v2323_v33, %v2322_v59 }
 0x836   :  { %v2325_v60 = vpop.f32.mrf.mxu1 }
 0x838   :  { %v2326_v15 = vpop.f32.mrf.mxu1 }
 0x839   :  { %v2327_v28 = vadd.f32 %v2326_v15, %v2325_v60 }
 0x8da   :  { %v2514_v53 = vpop.f32.mrf.mxu1 }
 0x8db   :  { %2515 = vmatprep.subr.msk.mxu0 %vm413_vm5, %v2514_v53 }
 0x8dc   :  { %v1800_v13 = vpop.f32.mrf.mxu1  ;;  %2516 = vmatpush3.xpose.msk.msra.mxu0 %vm413_vm5, %v2514_v53 }
 0x8dd   :  { %2517 = vmatprep.subr.msk.mxu0 %vm413_vm5, %v1800_v13 }
 0x8e0   :  { %2518 = vmatpush3.xpose.msk.msra.mxu0 %vm413_vm5, %v1800_v13 }
 0x8e3   :  { %2520 = vmatmul.mubr.msk.f32.vlgmr.msra.gmra.mxu0 %vm413_vm5, %v1616_v40 }
 0x9a3   :  { %v2521_v36 = vpop.f32.mrf.mxu0 }
 0x9a4   :  { %v1891_v2 = vmul.f32 %v2521_v36, %v2327_v28 }
 0x9a5   :  { %v1881_v6 = vpop.f32.mrf.mxu0 }
 0x9a6   :  { %v1890_v50 = vmul.f32 %v2324_v55, %v1881_v6  ;;  %v1976_v44 = vsel %vm57_vm0, %v1891_v2, 0.0 }
 0x9a7   :  { %1977 = vadd.xlane.f32.xlu1 %v1976_v44 }
 0x9a8   :  { %2526 = vmatprep.mubr.msk.f32.mxu1 %vm57_vm0, %v1890_v50  ;;  %v1973_v16 = vsel %vm57_vm0, %v1890_v50, 0.0 }
 0x9a9   :  { %1974 = vadd.xlane.f32.xlu0 %v1973_v16  ;;  %2527 = vmatmul.mubr.msk.f32.vlgmr.msra.gmra.mxu1 %vm57_vm0, %v1891_v2 }
 0xa30   :  { %v1978_v18 = vpop.xlane.xlu1 %1977 }
 0xa31   :  { %v1980_v20 = vmul.f32 %v2542_v37, %v1978_v18 }
 0xa32   :  { %v1975_v19 = vpop.xlane.xlu0 %1974 }
 0xa33   :  { %v1979_v24 = vmul.f32 %v2543_v57, %v1975_v19 }
 0xa69   :  { %v2528_v21 = vpop.f32.mrf.mxu1 }
 0xa6a   :  { %v1982_v26 = vsub.f32 %v2528_v21, %v1980_v20 }
 0xa6b   :  { %v1964_v32 = vpop.f32.mrf.mxu1 }
 0xa6c   :  { %1984 = vst [vmem:[%s3502_s13 + $0x8] sm:$0xff] %v1982_v26  ;;  %v1981_v34 = vsub.f32 %v1964_v32, %v1979_v24 }
 0xa6e   :  { %1983 = vst [vmem:[%s3502_s13] sm:$0xff] %v1981_v34 }

</bundles_post_ra>
